<compile_context>
chip_gen: v5e
topology: v5e:2x2
jax: 0.10.0
libtpu: 0.0.40
codegen_flags: <defaults>
</compile_context>

<pallas_src>
import functools

import jax
import jax.numpy as jnp
from jax import lax
from jax.experimental import pallas as pl
from jax.experimental.pallas import tpu as pltpu

LANE = 128
_VMEM_LIMIT = 48 * 1024 * 1024  # <= v7x physical VMEM (64 MiB), well under v5e/v6e


def _round_up(x, m):
    return (x + m - 1) // m * m


# -----------------------------------------------------------------------------
# Pass 1: direct conv (in-kernel tap loop over the padded NHWC image) fused with
# the per-channel sum / sum-of-squares reduction for train-mode BatchNorm.
#
#   x_ref   : (HP, WP, CP)       f32   one padded image (channels on lane axis)
#   w_ref   : (KH, KW, CP, TOC)  bf16  one OC tile of the weights
#   y_ref   : (OH*OW, TOC)       f32   conv output for this image / OC tile
#   sum_ref : (1, TOC)           f32   written only on the last batch step
#   ssq_ref : (1, TOC)           f32
#   s_acc/q_acc : persistent VMEM scratch accumulators (live across batch steps)
# -----------------------------------------------------------------------------
def conv_stats_kernel(x_ref, w_ref, y_ref, sum_ref, ssq_ref, s_acc, q_acc,
                      *, kh, kw, oh, ow, stride):
    b = pl.program_id(1)

    acc = None
    for i in range(kh):                     # static Python loops: fully unrolled taps
        row_sl = pl.ds(i, oh) if stride == 1 else pl.ds(i, oh, stride)
        for j in range(kw):
            col_sl = pl.ds(j, ow) if stride == 1 else pl.ds(j, ow, stride)
            patch = x_ref[row_sl, col_sl, :]                        # (OH, OW, CP) f32
            patch = patch.reshape(oh * ow, patch.shape[-1])
            # bf16 operands into the MXU, f32 accumulation.
            tap = jnp.dot(patch.astype(jnp.bfloat16), w_ref[i, j],
                          preferred_element_type=jnp.float32)       # (OH*OW, TOC)
            acc = tap if acc is None else acc + tap

    y_ref[...] = acc

    @pl.when(b == 0)
    def _():
        s_acc[...] = jnp.zeros_like(s_acc)
        q_acc[...] = jnp.zeros_like(q_acc)

    s_acc[...] += jnp.sum(acc, axis=0, keepdims=True)
    q_acc[...] += jnp.sum(acc * acc, axis=0, keepdims=True)

    @pl.when(b == pl.num_programs(1) - 1)
    def _():
        sum_ref[...] = s_acc[...]
        ssq_ref[...] = q_acc[...]


# -----------------------------------------------------------------------------
# Pass 2: fused BatchNorm affine + LeakyReLU(0.1), elementwise, in place.
# scale = gamma / sqrt(var + eps), shift = beta - mean * scale (precomputed glue).
# For 0 < slope < 1, LeakyReLU(z) == max(z, slope*z).
# -----------------------------------------------------------------------------
def bn_lrelu_kernel(y_ref, scale_ref, shift_ref, o_ref):
    z = y_ref[...] * scale_ref[...] + shift_ref[...]
    o_ref[...] = jnp.maximum(z, 0.1 * z)


@functools.partial(jax.jit, static_argnames=("stride", "padding", "eps"))
def cnn_block_forward(x, weight, gamma, beta, *, stride, padding, eps=1e-5):
    """x: (N, C, H, W); weight: (OC, C, KH, KW); gamma/beta: (OC,). Returns NCHW."""
    n, c, h, w = x.shape
    oc, _, kh, kw = weight.shape
    oh = (h + 2 * padding - kh) // stride + 1
    ow = (w + 2 * padding - kw) // stride + 1
    hp, wp = h + 2 * padding, w + 2 * padding
    ohw = oh * ow
    m = n * ohw

    # Channel padding: OC -> multiple of the 128-lane width (lane-dense stores),
    # C -> multiple of 8 (sublane-friendly contraction dim; zero pads are exact).
    ocp = _round_up(oc, LANE)
    cp = _round_up(c, 8)
    toc = 256 if ocp % 256 == 0 else LANE
    grid_oc = ocp // toc

    # NCHW -> padded NHWC (channels on the lane axis).  Activation tile kept f32 in
    # VMEM so the unaligned per-tap slices stay on the robust f32 layout path; the
    # cast to bf16 happens in-register right before each MXU dot.
    x_nhwc = jnp.transpose(x.astype(jnp.float32), (0, 2, 3, 1))
    x_pad = jnp.pad(
        x_nhwc,
        ((0, 0), (padding, padding), (padding, padding), (0, cp - c)))

    # OIHW -> HWIO, zero-padded channels, cast once to bf16 for the MXU.
    w_hwio = jnp.transpose(weight, (2, 3, 1, 0)).astype(jnp.bfloat16)
    w_hwio = jnp.pad(w_hwio, ((0, 0), (0, 0), (0, cp - c), (0, ocp - oc)))

    kern = functools.partial(conv_stats_kernel,
                             kh=kh, kw=kw, oh=oh, ow=ow, stride=stride)

    flops = 2 * m * (cp * kh * kw) * ocp
    bytes_accessed = (x_pad.size * 4 * grid_oc + w_hwio.size * 2
                      + m * ocp * 4 + 2 * ocp * 4)

    # ---- Pallas pass 1: direct conv + per-channel sum / sumsq reduction ----
    y, ch_sum, ch_ssq = pl.pallas_call(
        kern,
        out_shape=(
            jax.ShapeDtypeStruct((n, ohw, ocp), jnp.float32),
            jax.ShapeDtypeStruct((1, ocp), jnp.float32),
            jax.ShapeDtypeStruct((1, ocp), jnp.float32),
        ),
        grid_spec=pltpu.PrefetchScalarGridSpec(
            num_scalar_prefetch=0,
            grid=(grid_oc, n),
            in_specs=[
                pl.BlockSpec((None, hp, wp, cp), lambda o, b: (b, 0, 0, 0)),
                pl.BlockSpec((kh, kw, cp, toc), lambda o, b: (0, 0, 0, o)),
            ],
            out_specs=[
                pl.BlockSpec((None, ohw, toc), lambda o, b: (b, 0, o)),
                pl.BlockSpec((1, toc), lambda o, b: (0, o)),
                pl.BlockSpec((1, toc), lambda o, b: (0, o)),
            ],
            scratch_shapes=[
                pltpu.VMEM((1, toc), jnp.float32),
                pltpu.VMEM((1, toc), jnp.float32),
            ],
        ),
        compiler_params=pltpu.CompilerParams(
            dimension_semantics=("parallel", "arbitrary"),
            vmem_limit_bytes=_VMEM_LIMIT,
        ),
        cost_estimate=pl.CostEstimate(
            flops=flops, transcendentals=0, bytes_accessed=bytes_accessed),
    )(x_pad, w_hwio)

    # ---- glue: fold batch statistics into per-channel affine scale/shift ----
    cnt = jnp.float32(m)
    mean = ch_sum / cnt                                    # (1, OCP)
    var = jnp.maximum(ch_ssq / cnt - mean * mean, 0.0)     # one-pass var, clamped
    inv_std = 1.0 / jnp.sqrt(var + eps)
    gamma_p = jnp.pad(gamma.astype(jnp.float32), (0, ocp - oc))
    beta_p = jnp.pad(beta.astype(jnp.float32), (0, ocp - oc))
    scale = gamma_p[None, :] * inv_std
    shift = beta_p[None, :] - mean * scale

    # ---- Pallas pass 2: fused BatchNorm apply + LeakyReLU(0.1), in place ----
    y2d = y.reshape(m, ocp)
    # Pick the row tile so one f32 block stays ~<= 4 MiB (double-buffered in+out),
    # keep it sublane-aligned (multiple of 8) unless it covers the whole array.
    row_budget = max(8, (4 * 1024 * 1024) // (ocp * 4))
    tm = m if m <= row_budget else max(8, (row_budget // 8) * 8)
    grid_m = pl.cdiv(m, tm)

    out_flat = pl.pallas_call(
        bn_lrelu_kernel,
        out_shape=jax.ShapeDtypeStruct((m, ocp), jnp.float32),
        grid_spec=pltpu.PrefetchScalarGridSpec(
            num_scalar_prefetch=0,
            grid=(grid_m,),
            in_specs=[
                pl.BlockSpec((tm, ocp), lambda i: (i, 0)),
                pl.BlockSpec((1, ocp), lambda i: (0, 0)),
                pl.BlockSpec((1, ocp), lambda i: (0, 0)),
            ],
            out_specs=pl.BlockSpec((tm, ocp), lambda i: (i, 0)),
        ),
        input_output_aliases={0: 0},   # overwrite y in place (no extra HBM buffer)
        compiler_params=pltpu.CompilerParams(
            dimension_semantics=("parallel",),
            vmem_limit_bytes=_VMEM_LIMIT,
        ),
    )(y2d, scale, shift)

    # (N*OH*OW, OCP) -> NCHW, dropping channel padding.
    # TODO(synk): when stacking CNNBlocks, keep NHWC between blocks and drop this
    # transpose (saves a full read+write of the activation per layer).
    out = out_flat.reshape(n, oh, ow, ocp)[..., :oc].transpose(0, 3, 1, 2)
    return out


def reference_forward(x, weight, gamma, beta, *, stride, padding, eps=1e-5):
    """Plain-JAX reference mirroring PyTorch semantics (training-mode BN)."""
    y = lax.conv_general_dilated(
        x.astype(jnp.float32),
        weight.astype(jnp.float32),
        window_strides=(stride, stride),
        padding=[(padding, padding), (padding, padding)],
        dimension_numbers=("NCHW", "OIHW", "NCHW"),
    )
    mean = jnp.mean(y, axis=(0, 2, 3), keepdims=True)
    var = jnp.mean((y - mean) ** 2, axis=(0, 2, 3), keepdims=True)
    yhat = (y - mean) / jnp.sqrt(var + eps)
    z = gamma[None, :, None, None] * yhat + beta[None, :, None, None]
    return jnp.where(z > 0, z, 0.1 * z)


if __name__ == "__main__":
    # Small shapes consistent with a YOLOv1 CNNBlock: 3x3 conv, stride 1, pad 1.
    N, C, H, W = 2, 4, 16, 16
    OC, KH, KW = 8, 3, 3
    stride, padding = 1, 1

    key = jax.random.PRNGKey(0)
    kx, kw_, kg, kb = jax.random.split(key, 4)
    x = jax.random.normal(kx, (N, C, H, W), dtype=jnp.float32)
    weight = jax.random.normal(kw_, (OC, C, KH, KW), dtype=jnp.float32) * 0.1
    gamma = 1.0 + 0.1 * jax.random.normal(kg, (OC,), dtype=jnp.float32)
    beta = 0.1 * jax.random.normal(kb, (OC,), dtype=jnp.float32)

    # Round inputs to bf16 once so the bf16-MXU kernel and the f32 reference see
    # identical operand values (bf16 products accumulate exactly in f32).
    xq = x.astype(jnp.bfloat16).astype(jnp.float32)
    wq = weight.astype(jnp.bfloat16).astype(jnp.float32)

    out = cnn_block_forward(xq, wq, gamma, beta, stride=stride, padding=padding)
    out = jax.block_until_ready(out)

    ref = reference_forward(xq, wq, gamma, beta, stride=stride, padding=padding)
    assert out.shape == (N, OC, H, W), out.shape
    max_err = float(jnp.max(jnp.abs(out - ref)))
    assert jnp.allclose(out, ref, atol=2e-3, rtol=2e-3), max_err
    print("KERNEL_OK")
</pallas_src>

<mosaic_0001>
module attributes {stable_mosaic.version = 11 : i64} {
  func.func @bn_lrelu_kernel(%arg0: i32, %arg1: memref<512x128xf32, #tpu.memory_space<vmem>>, %arg2: memref<1x128xf32, #tpu.memory_space<vmem>>, %arg3: memref<1x128xf32, #tpu.memory_space<vmem>>, %arg4: memref<512x128xf32, #tpu.memory_space<vmem>>) attributes {dimension_semantics = [#tpu.dimension_semantics<parallel>], iteration_bounds = array<i64: 1>, scalar_prefetch = 0 : i64, scratch_operands = 0 : i64, tpu.core_type = #tpu.core_type<tc>, window_params = [{transform_indices = @transform_0, window_bounds = array<i64: 512, 128>}, {pipeline_mode = #tpu.pipeline_mode<synchronous>, transform_indices = @transform_1, window_bounds = array<i64: 1, 128>}, {pipeline_mode = #tpu.pipeline_mode<synchronous>, transform_indices = @transform_2, window_bounds = array<i64: 1, 128>}, {transform_indices = @transform_3, window_bounds = array<i64: 512, 128>}]} {
    %c0 = arith.constant 0 : index
    %c0_0 = arith.constant 0 : index
    %0 = vector.load %arg1[%c0, %c0_0] : memref<512x128xf32, #tpu.memory_space<vmem>>, vector<512x128xf32>
    %c0_1 = arith.constant 0 : index
    %c0_2 = arith.constant 0 : index
    %1 = vector.load %arg2[%c0_1, %c0_2] : memref<1x128xf32, #tpu.memory_space<vmem>>, vector<1x128xf32>
    %2 = vector.broadcast %1 : vector<1x128xf32> to vector<512x128xf32>
    %3 = arith.mulf %0, %2 : vector<512x128xf32>
    %c0_3 = arith.constant 0 : index
    %c0_4 = arith.constant 0 : index
    %4 = vector.load %arg3[%c0_3, %c0_4] : memref<1x128xf32, #tpu.memory_space<vmem>>, vector<1x128xf32>
    %5 = vector.broadcast %4 : vector<1x128xf32> to vector<512x128xf32>
    %6 = arith.addf %3, %5 : vector<512x128xf32>
    %cst = arith.constant 1.000000e-01 : f32
    %7 = vector.broadcast %cst : f32 to vector<512x128xf32>
    %8 = arith.mulf %7, %6 : vector<512x128xf32>
    %9 = arith.maximumf %6, %8 : vector<512x128xf32>
    %c0_5 = arith.constant 0 : index
    %c0_6 = arith.constant 0 : index
    %10 = vector.load %arg4[%c0_5, %c0_6] : memref<512x128xf32, #tpu.memory_space<vmem>>, vector<512x128xf32>
    tpu.vector_store %arg4[%c0_5, %c0_6], %9 {strides = array<i32>} : memref<512x128xf32, #tpu.memory_space<vmem>>, vector<512x128xf32>,
    return
  }
  func.func @transform_0(%arg0: i32) -> (i32, i32) {
    %c0_i32 = arith.constant 0 : i32
    %c0_i32_0 = arith.constant 0 : i32
    return %arg0, %c0_i32 : i32, i32
  }
  func.func @transform_1(%arg0: i32) -> (i32, i32) {
    %c0_i32 = arith.constant 0 : i32
    %c0_i32_0 = arith.constant 0 : i32
    %c0_i32_1 = arith.constant 0 : i32
    return %c0_i32, %c0_i32_0 : i32, i32
  }
  func.func @transform_2(%arg0: i32) -> (i32, i32) {
    %c0_i32 = arith.constant 0 : i32
    %c0_i32_0 = arith.constant 0 : i32
    %c0_i32_1 = arith.constant 0 : i32
    return %c0_i32, %c0_i32_0 : i32, i32
  }
  func.func @transform_3(%arg0: i32) -> (i32, i32) {
    %c0_i32 = arith.constant 0 : i32
    %c0_i32_0 = arith.constant 0 : i32
    return %arg0, %c0_i32 : i32, i32
  }
}

module attributes {stable_mosaic.version = 11 : i64} {
  func.func @conv_stats_kernel(%arg0: i32, %arg1: i32, %arg2: memref<1x18x18x8xf32, #tpu.memory_space<vmem>>, %arg3: memref<3x3x8x128xbf16, #tpu.memory_space<vmem>>, %arg4: memref<1x256x128xf32, #tpu.memory_space<vmem>>, %arg5: memref<1x128xf32, #tpu.memory_space<vmem>>, %arg6: memref<1x128xf32, #tpu.memory_space<vmem>>, %arg7: memref<1x128xf32, #tpu.memory_space<vmem>>, %arg8: memref<1x128xf32, #tpu.memory_space<vmem>>) attributes {dimension_semantics = [#tpu.dimension_semantics<parallel>, #tpu.dimension_semantics<arbitrary>], iteration_bounds = array<i64: 1, 2>, scalar_prefetch = 0 : i64, scratch_operands = 2 : i64, tpu.core_type = #tpu.core_type<tc>, window_params = [{transform_indices = @transform_0, window_bounds = array<i64: 1, 18, 18, 8>}, {transform_indices = @transform_1, window_bounds = array<i64: 3, 3, 8, 128>}, {transform_indices = @transform_2, window_bounds = array<i64: 1, 256, 128>}, {transform_indices = @transform_3, window_bounds = array<i64: 1, 128>}, {transform_indices = @transform_4, window_bounds = array<i64: 1, 128>}]} {
    %c0 = arith.constant 0 : index
    %c0_0 = arith.constant 0 : index
    %c0_1 = arith.constant 0 : index
    %c0_2 = arith.constant 0 : index
    %0 = vector.load %arg2[%c0, %c0_0, %c0_1, %c0_2] : memref<1x18x18x8xf32, #tpu.memory_space<vmem>>, vector<1x16x16x8xf32>
    %1 = vector.shape_cast %0 : vector<1x16x16x8xf32> to vector<16x16x8xf32>
    %2 = vector.shape_cast %1 : vector<16x16x8xf32> to vector<256x8xf32>
    %3 = arith.truncf %2 : vector<256x8xf32> to vector<256x8xbf16>
    %c0_3 = arith.constant 0 : index
    %c0_4 = arith.constant 0 : index
    %c0_5 = arith.constant 0 : index
    %c0_6 = arith.constant 0 : index
    %4 = vector.load %arg3[%c0_3, %c0_4, %c0_5, %c0_6] : memref<3x3x8x128xbf16, #tpu.memory_space<vmem>>, vector<1x1x8x128xbf16>
    %5 = vector.shape_cast %4 : vector<1x1x8x128xbf16> to vector<8x128xbf16>
    %cst = arith.constant dense<0.000000e+00> : vector<256x128xf32>
    %6 = tpu.matmul %3, %5, %cst {dimension_numbers = #tpu.dot_dimension_numbers<[1], [0], [0], [1], [0, 0, 1, 1], [], []>} : vector<256x8xbf16>, vector<8x128xbf16>, vector<256x128xf32> -> vector<256x128xf32>
    %c0_7 = arith.constant 0 : index
    %c0_8 = arith.constant 0 : index
    %c1 = arith.constant 1 : index
    %c0_9 = arith.constant 0 : index
    %7 = vector.load %arg2[%c0_7, %c0_8, %c1, %c0_9] : memref<1x18x18x8xf32, #tpu.memory_space<vmem>>, vector<1x16x16x8xf32>
    %8 = vector.shape_cast %7 : vector<1x16x16x8xf32> to vector<16x16x8xf32>
    %9 = vector.shape_cast %8 : vector<16x16x8xf32> to vector<256x8xf32>
    %10 = arith.truncf %9 : vector<256x8xf32> to vector<256x8xbf16>
    %c0_10 = arith.constant 0 : index
    %c1_11 = arith.constant 1 : index
    %c0_12 = arith.constant 0 : index
    %c0_13 = arith.constant 0 : index
    %11 = vector.load %arg3[%c0_10, %c1_11, %c0_12, %c0_13] : memref<3x3x8x128xbf16, #tpu.memory_space<vmem>>, vector<1x1x8x128xbf16>
    %12 = vector.shape_cast %11 : vector<1x1x8x128xbf16> to vector<8x128xbf16>
    %cst_14 = arith.constant dense<0.000000e+00> : vector<256x128xf32>
    %13 = tpu.matmul %10, %12, %cst_14 {dimension_numbers = #tpu.dot_dimension_numbers<[1], [0], [0], [1], [0, 0, 1, 1], [], []>} : vector<256x8xbf16>, vector<8x128xbf16>, vector<256x128xf32> -> vector<256x128xf32>
    %14 = arith.addf %6, %13 : vector<256x128xf32>
    %c0_15 = arith.constant 0 : index
    %c0_16 = arith.constant 0 : index
    %c2 = arith.constant 2 : index
    %c0_17 = arith.constant 0 : index
    %15 = vector.load %arg2[%c0_15, %c0_16, %c2, %c0_17] : memref<1x18x18x8xf32, #tpu.memory_space<vmem>>, vector<1x16x16x8xf32>
    %16 = vector.shape_cast %15 : vector<1x16x16x8xf32> to vector<16x16x8xf32>
    %17 = vector.shape_cast %16 : vector<16x16x8xf32> to vector<256x8xf32>
    %18 = arith.truncf %17 : vector<256x8xf32> to vector<256x8xbf16>
    %c0_18 = arith.constant 0 : index
    %c2_19 = arith.constant 2 : index
    %c0_20 = arith.constant 0 : index
    %c0_21 = arith.constant 0 : index
    %19 = vector.load %arg3[%c0_18, %c2_19, %c0_20, %c0_21] : memref<3x3x8x128xbf16, #tpu.memory_space<vmem>>, vector<1x1x8x128xbf16>
    %20 = vector.shape_cast %19 : vector<1x1x8x128xbf16> to vector<8x128xbf16>
    %cst_22 = arith.constant dense<0.000000e+00> : vector<256x128xf32>
    %21 = tpu.matmul %18, %20, %cst_22 {dimension_numbers = #tpu.dot_dimension_numbers<[1], [0], [0], [1], [0, 0, 1, 1], [], []>} : vector<256x8xbf16>, vector<8x128xbf16>, vector<256x128xf32> -> vector<256x128xf32>
    %22 = arith.addf %14, %21 : vector<256x128xf32>
    %c0_23 = arith.constant 0 : index
    %c1_24 = arith.constant 1 : index
    %c0_25 = arith.constant 0 : index
    %c0_26 = arith.constant 0 : index
    %23 = vector.load %arg2[%c0_23, %c1_24, %c0_25, %c0_26] : memref<1x18x18x8xf32, #tpu.memory_space<vmem>>, vector<1x16x16x8xf32>
    %24 = vector.shape_cast %23 : vector<1x16x16x8xf32> to vector<16x16x8xf32>
    %25 = vector.shape_cast %24 : vector<16x16x8xf32> to vector<256x8xf32>
    %26 = arith.truncf %25 : vector<256x8xf32> to vector<256x8xbf16>
    %c1_27 = arith.constant 1 : index
    %c0_28 = arith.constant 0 : index
    %c0_29 = arith.constant 0 : index
    %c0_30 = arith.constant 0 : index
    %27 = vector.load %arg3[%c1_27, %c0_28, %c0_29, %c0_30] : memref<3x3x8x128xbf16, #tpu.memory_space<vmem>>, vector<1x1x8x128xbf16>
    %28 = vector.shape_cast %27 : vector<1x1x8x128xbf16> to vector<8x128xbf16>
    %cst_31 = arith.constant dense<0.000000e+00> : vector<256x128xf32>
    %29 = tpu.matmul %26, %28, %cst_31 {dimension_numbers = #tpu.dot_dimension_numbers<[1], [0], [0], [1], [0, 0, 1, 1], [], []>} : vector<256x8xbf16>, vector<8x128xbf16>, vector<256x128xf32> -> vector<256x128xf32>
    %30 = arith.addf %22, %29 : vector<256x128xf32>
    %c0_32 = arith.constant 0 : index
    %c1_33 = arith.constant 1 : index
    %c1_34 = arith.constant 1 : index
    %c0_35 = arith.constant 0 : index
    %31 = vector.load %arg2[%c0_32, %c1_33, %c1_34, %c0_35] : memref<1x18x18x8xf32, #tpu.memory_space<vmem>>, vector<1x16x16x8xf32>
    %32 = vector.shape_cast %31 : vector<1x16x16x8xf32> to vector<16x16x8xf32>
    %33 = vector.shape_cast %32 : vector<16x16x8xf32> to vector<256x8xf32>
    %34 = arith.truncf %33 : vector<256x8xf32> to vector<256x8xbf16>
    %c1_36 = arith.constant 1 : index
    %c1_37 = arith.constant 1 : index
    %c0_38 = arith.constant 0 : index
    %c0_39 = arith.constant 0 : index
    %35 = vector.load %arg3[%c1_36, %c1_37, %c0_38, %c0_39] : memref<3x3x8x128xbf16, #tpu.memory_space<vmem>>, vector<1x1x8x128xbf16>
    %36 = vector.shape_cast %35 : vector<1x1x8x128xbf16> to vector<8x128xbf16>
    %cst_40 = arith.constant dense<0.000000e+00> : vector<256x128xf32>
    %37 = tpu.matmul %34, %36, %cst_40 {dimension_numbers = #tpu.dot_dimension_numbers<[1], [0], [0], [1], [0, 0, 1, 1], [], []>} : vector<256x8xbf16>, vector<8x128xbf16>, vector<256x128xf32> -> vector<256x128xf32>
    %38 = arith.addf %30, %37 : vector<256x128xf32>
    %c0_41 = arith.constant 0 : index
    %c1_42 = arith.constant 1 : index
    %c2_43 = arith.constant 2 : index
    %c0_44 = arith.constant 0 : index
    %39 = vector.load %arg2[%c0_41, %c1_42, %c2_43, %c0_44] : memref<1x18x18x8xf32, #tpu.memory_space<vmem>>, vector<1x16x16x8xf32>
    %40 = vector.shape_cast %39 : vector<1x16x16x8xf32> to vector<16x16x8xf32>
    %41 = vector.shape_cast %40 : vector<16x16x8xf32> to vector<256x8xf32>
    %42 = arith.truncf %41 : vector<256x8xf32> to vector<256x8xbf16>
    %c1_45 = arith.constant 1 : index
    %c2_46 = arith.constant 2 : index
    %c0_47 = arith.constant 0 : index
    %c0_48 = arith.constant 0 : index
    %43 = vector.load %arg3[%c1_45, %c2_46, %c0_47, %c0_48] : memref<3x3x8x128xbf16, #tpu.memory_space<vmem>>, vector<1x1x8x128xbf16>
    %44 = vector.shape_cast %43 : vector<1x1x8x128xbf16> to vector<8x128xbf16>
    %cst_49 = arith.constant dense<0.000000e+00> : vector<256x128xf32>
    %45 = tpu.matmul %42, %44, %cst_49 {dimension_numbers = #tpu.dot_dimension_numbers<[1], [0], [0], [1], [0, 0, 1, 1], [], []>} : vector<256x8xbf16>, vector<8x128xbf16>, vector<256x128xf32> -> vector<256x128xf32>
    %46 = arith.addf %38, %45 : vector<256x128xf32>
    %c0_50 = arith.constant 0 : index
    %c2_51 = arith.constant 2 : index
    %c0_52 = arith.constant 0 : index
    %c0_53 = arith.constant 0 : index
    %47 = vector.load %arg2[%c0_50, %c2_51, %c0_52, %c0_53] : memref<1x18x18x8xf32, #tpu.memory_space<vmem>>, vector<1x16x16x8xf32>
    %48 = vector.shape_cast %47 : vector<1x16x16x8xf32> to vector<16x16x8xf32>
    %49 = vector.shape_cast %48 : vector<16x16x8xf32> to vector<256x8xf32>
    %50 = arith.truncf %49 : vector<256x8xf32> to vector<256x8xbf16>
    %c2_54 = arith.constant 2 : index
    %c0_55 = arith.constant 0 : index
    %c0_56 = arith.constant 0 : index
    %c0_57 = arith.constant 0 : index
    %51 = vector.load %arg3[%c2_54, %c0_55, %c0_56, %c0_57] : memref<3x3x8x128xbf16, #tpu.memory_space<vmem>>, vector<1x1x8x128xbf16>
    %52 = vector.shape_cast %51 : vector<1x1x8x128xbf16> to vector<8x128xbf16>
    %cst_58 = arith.constant dense<0.000000e+00> : vector<256x128xf32>
    %53 = tpu.matmul %50, %52, %cst_58 {dimension_numbers = #tpu.dot_dimension_numbers<[1], [0], [0], [1], [0, 0, 1, 1], [], []>} : vector<256x8xbf16>, vector<8x128xbf16>, vector<256x128xf32> -> vector<256x128xf32>
    %54 = arith.addf %46, %53 : vector<256x128xf32>
    %c0_59 = arith.constant 0 : index
    %c2_60 = arith.constant 2 : index
    %c1_61 = arith.constant 1 : index
    %c0_62 = arith.constant 0 : index
    %55 = vector.load %arg2[%c0_59, %c2_60, %c1_61, %c0_62] : memref<1x18x18x8xf32, #tpu.memory_space<vmem>>, vector<1x16x16x8xf32>
    %56 = vector.shape_cast %55 : vector<1x16x16x8xf32> to vector<16x16x8xf32>
    %57 = vector.shape_cast %56 : vector<16x16x8xf32> to vector<256x8xf32>
    %58 = arith.truncf %57 : vector<256x8xf32> to vector<256x8xbf16>
    %c2_63 = arith.constant 2 : index
    %c1_64 = arith.constant 1 : index
    %c0_65 = arith.constant 0 : index
    %c0_66 = arith.constant 0 : index
    %59 = vector.load %arg3[%c2_63, %c1_64, %c0_65, %c0_66] : memref<3x3x8x128xbf16, #tpu.memory_space<vmem>>, vector<1x1x8x128xbf16>
    %60 = vector.shape_cast %59 : vector<1x1x8x128xbf16> to vector<8x128xbf16>
    %cst_67 = arith.constant dense<0.000000e+00> : vector<256x128xf32>
    %61 = tpu.matmul %58, %60, %cst_67 {dimension_numbers = #tpu.dot_dimension_numbers<[1], [0], [0], [1], [0, 0, 1, 1], [], []>} : vector<256x8xbf16>, vector<8x128xbf16>, vector<256x128xf32> -> vector<256x128xf32>
    %62 = arith.addf %54, %61 : vector<256x128xf32>
    %c0_68 = arith.constant 0 : index
    %c2_69 = arith.constant 2 : index
    %c2_70 = arith.constant 2 : index
    %c0_71 = arith.constant 0 : index
    %63 = vector.load %arg2[%c0_68, %c2_69, %c2_70, %c0_71] : memref<1x18x18x8xf32, #tpu.memory_space<vmem>>, vector<1x16x16x8xf32>
    %64 = vector.shape_cast %63 : vector<1x16x16x8xf32> to vector<16x16x8xf32>
    %65 = vector.shape_cast %64 : vector<16x16x8xf32> to vector<256x8xf32>
    %66 = arith.truncf %65 : vector<256x8xf32> to vector<256x8xbf16>
    %c2_72 = arith.constant 2 : index
    %c2_73 = arith.constant 2 : index
    %c0_74 = arith.constant 0 : index
    %c0_75 = arith.constant 0 : index
    %67 = vector.load %arg3[%c2_72, %c2_73, %c0_74, %c0_75] : memref<3x3x8x128xbf16, #tpu.memory_space<vmem>>, vector<1x1x8x128xbf16>
    %68 = vector.shape_cast %67 : vector<1x1x8x128xbf16> to vector<8x128xbf16>
    %cst_76 = arith.constant dense<0.000000e+00> : vector<256x128xf32>
    %69 = tpu.matmul %66, %68, %cst_76 {dimension_numbers = #tpu.dot_dimension_numbers<[1], [0], [0], [1], [0, 0, 1, 1], [], []>} : vector<256x8xbf16>, vector<8x128xbf16>, vector<256x128xf32> -> vector<256x128xf32>
    %70 = arith.addf %62, %69 : vector<256x128xf32>
    %c0_77 = arith.constant 0 : index
    %c0_78 = arith.constant 0 : index
    %c0_79 = arith.constant 0 : index
    %71 = vector.load %arg4[%c0_77, %c0_78, %c0_79] : memref<1x256x128xf32, #tpu.memory_space<vmem>>, vector<1x256x128xf32>
    %72 = vector.shape_cast %71 : vector<1x256x128xf32> to vector<256x128xf32>
    %73 = vector.shape_cast %70 : vector<256x128xf32> to vector<1x256x128xf32>
    tpu.vector_store %arg4[%c0_77, %c0_78, %c0_79], %73 {strides = array<i32>} : memref<1x256x128xf32, #tpu.memory_space<vmem>>, vector<1x256x128xf32>,
    %c0_i32 = arith.constant 0 : i32
    %74 = arith.cmpi eq, %arg1, %c0_i32 : i32
    %75 = arith.extui %74 : i1 to i32
    %c0_i32_80 = arith.constant 0 : i32
    %76 = arith.cmpi ne, %75, %c0_i32_80 : i32
    scf.if %76 {
      %cst_92 = arith.constant 0.000000e+00 : f32
      %91 = vector.broadcast %cst_92 : f32 to vector<1x128xf32>
      %c0_93 = arith.constant 0 : index
      %c0_94 = arith.constant 0 : index
      %92 = vector.load %arg7[%c0_93, %c0_94] : memref<1x128xf32, #tpu.memory_space<vmem>>, vector<1x128xf32>
      tpu.vector_store %arg7[%c0_93, %c0_94], %91 {strides = array<i32>} : memref<1x128xf32, #tpu.memory_space<vmem>>, vector<1x128xf32>,
      %cst_95 = arith.constant 0.000000e+00 : f32
      %93 = vector.broadcast %cst_95 : f32 to vector<1x128xf32>
      %c0_96 = arith.constant 0 : index
      %c0_97 = arith.constant 0 : index
      %94 = vector.load %arg8[%c0_96, %c0_97] : memref<1x128xf32, #tpu.memory_space<vmem>>, vector<1x128xf32>
      tpu.vector_store %arg8[%c0_96, %c0_97], %93 {strides = array<i32>} : memref<1x128xf32, #tpu.memory_space<vmem>>, vector<1x128xf32>,
    } else {
    }
    %c0_81 = arith.constant 0 : index
    %c0_82 = arith.constant 0 : index
    %77 = vector.load %arg7[%c0_81, %c0_82] : memref<1x128xf32, #tpu.memory_space<vmem>>, vector<1x128xf32>
    %cst_83 = arith.constant dense<0.000000e+00> : vector<128xf32>
    %78 = vector.multi_reduction <add>, %70, %cst_83 [0] : vector<256x128xf32> to vector<128xf32>
    %79 = vector.shape_cast %78 : vector<128xf32> to vector<1x128xf32>
    %80 = arith.addf %77, %79 : vector<1x128xf32>
    %c0_84 = arith.constant 0 : index
    %c0_85 = arith.constant 0 : index
    %81 = vector.load %arg7[%c0_84, %c0_85] : memref<1x128xf32, #tpu.memory_space<vmem>>, vector<1x128xf32>
    tpu.vector_store %arg7[%c0_84, %c0_85], %80 {strides = array<i32>} : memref<1x128xf32, #tpu.memory_space<vmem>>, vector<1x128xf32>,
    %c0_86 = arith.constant 0 : index
    %c0_87 = arith.constant 0 : index
    %82 = vector.load %arg8[%c0_86, %c0_87] : memref<1x128xf32, #tpu.memory_space<vmem>>, vector<1x128xf32>
    %83 = arith.mulf %70, %70 : vector<256x128xf32>
    %cst_88 = arith.constant dense<0.000000e+00> : vector<128xf32>
    %84 = vector.multi_reduction <add>, %83, %cst_88 [0] : vector<256x128xf32> to vector<128xf32>
    %85 = vector.shape_cast %84 : vector<128xf32> to vector<1x128xf32>
    %86 = arith.addf %82, %85 : vector<1x128xf32>
    %c0_89 = arith.constant 0 : index
    %c0_90 = arith.constant 0 : index
    %87 = vector.load %arg8[%c0_89, %c0_90] : memref<1x128xf32, #tpu.memory_space<vmem>>, vector<1x128xf32>
    tpu.vector_store %arg8[%c0_89, %c0_90], %86 {strides = array<i32>} : memref<1x128xf32, #tpu.memory_space<vmem>>, vector<1x128xf32>,
    %c1_i32 = arith.constant 1 : i32
    %88 = arith.cmpi eq, %arg1, %c1_i32 : i32
    %89 = arith.extui %88 : i1 to i32
    %c0_i32_91 = arith.constant 0 : i32
    %90 = arith.cmpi ne, %89, %c0_i32_91 : i32
    scf.if %90 {
      %c0_92 = arith.constant 0 : index
      %c0_93 = arith.constant 0 : index
      %91 = vector.load %arg7[%c0_92, %c0_93] : memref<1x128xf32, #tpu.memory_space<vmem>>, vector<1x128xf32>
      %c0_94 = arith.constant 0 : index
      %c0_95 = arith.constant 0 : index
      %92 = vector.load %arg5[%c0_94, %c0_95] : memref<1x128xf32, #tpu.memory_space<vmem>>, vector<1x128xf32>
      tpu.vector_store %arg5[%c0_94, %c0_95], %91 {strides = array<i32>} : memref<1x128xf32, #tpu.memory_space<vmem>>, vector<1x128xf32>,
      %c0_96 = arith.constant 0 : index
      %c0_97 = arith.constant 0 : index
      %93 = vector.load %arg8[%c0_96, %c0_97] : memref<1x128xf32, #tpu.memory_space<vmem>>, vector<1x128xf32>
      %c0_98 = arith.constant 0 : index
      %c0_99 = arith.constant 0 : index
      %94 = vector.load %arg6[%c0_98, %c0_99] : memref<1x128xf32, #tpu.memory_space<vmem>>, vector<1x128xf32>
      tpu.vector_store %arg6[%c0_98, %c0_99], %93 {strides = array<i32>} : memref<1x128xf32, #tpu.memory_space<vmem>>, vector<1x128xf32>,
    } else {
    }
    return
  }
  func.func @transform_0(%arg0: i32, %arg1: i32) -> (i32, i32, i32, i32) {
    %c0_i32 = arith.constant 0 : i32
    %c0_i32_0 = arith.constant 0 : i32
    %c0_i32_1 = arith.constant 0 : i32
    %c0_i32_2 = arith.constant 0 : i32
    return %arg1, %c0_i32, %c0_i32_0, %c0_i32_1 : i32, i32, i32, i32
  }
  func.func @transform_1(%arg0: i32, %arg1: i32) -> (i32, i32, i32, i32) {
    %c0_i32 = arith.constant 0 : i32
    %c0_i32_0 = arith.constant 0 : i32
    %c0_i32_1 = arith.constant 0 : i32
    %c0_i32_2 = arith.constant 0 : i32
    return %c0_i32, %c0_i32_0, %c0_i32_1, %arg0 : i32, i32, i32, i32
  }
  func.func @transform_2(%arg0: i32, %arg1: i32) -> (i32, i32, i32) {
    %c0_i32 = arith.constant 0 : i32
    %c0_i32_0 = arith.constant 0 : i32
    return %arg1, %c0_i32, %arg0 : i32, i32, i32
  }
  func.func @transform_3(%arg0: i32, %arg1: i32) -> (i32, i32) {
    %c0_i32 = arith.constant 0 : i32
    %c0_i32_0 = arith.constant 0 : i32
    return %c0_i32, %arg0 : i32, i32
  }
  func.func @transform_4(%arg0: i32, %arg1: i32) -> (i32, i32) {
    %c0_i32 = arith.constant 0 : i32
    %c0_i32_0 = arith.constant 0 : i32
    return %c0_i32, %arg0 : i32, i32
  }
}

</mosaic_0001>

<bundles_post_ra>
// kernel: cnn_block_forward.3
= control target key start
LH: loop header
LB: loop body
LE: loop exit
PB: predicated region body
PF: predicated region fallthrough
CT: control target
= control target key end

     0   :  { %s954_s0 = inlined_call_operand.vmem [shape: f32[512,128], index: 0, kind: input, shape index: {}, may-alias: {0,3}]   ;;  %s955_s1 = inlined_call_operand.vmem [shape: f32[1,128], index: 1, kind: input, shape index: {}]   ;;  %s956_s2 = inlined_call_operand.vmem [shape: f32[1,128], index: 2, kind: input, shape index: {}]   ;;  %s957_s3 = inlined_call_operand.vmem [shape: f32[512,128], index: 3, kind: output, shape index: {}, may-alias: {0,3}]  }
   0x1   :  { %v14_v0 = vld [vmem:[%s954_s0] sm:$0xff]  ;;  %v15_v3 = vld [vmem:[%s954_s0 + $0x8] sm:$0xff]  ;;  %v16_v6 = vld [vmem:[%s954_s0 + $0x10] sm:$0xff] }
   0x2   :  { %v438_v1 = vld [vmem:[%s955_s1] ss:$0 sm:$0xff]  ;;  %v17_v7 = vld [vmem:[%s954_s0 + $0x18] sm:$0xff]  ;;  %v19_v12 = vld [vmem:[%s954_s0 + $0x28] sm:$0xff] }
   0x3   :  { %v443_v2 = vld [vmem:[%s956_s2] ss:$0 sm:$0xff]  ;;  %v82_v4 = vmul.f32 %v438_v1, %v14_v0  ;;  %v83_v5 = vmul.f32 %v438_v1, %v15_v3  ;;  %v84_v9 = vmul.f32 %v438_v1, %v16_v6  ;;  %v85_v10 = vmul.f32 %v438_v1, %v17_v7  ;;  %v20_v13 = vld [vmem:[%s954_s0 + $0x30] sm:$0xff]  ;;  %v21_v14 = vld [vmem:[%s954_s0 + $0x38] sm:$0xff] }
   0x4   :  { %v18_v8 = vld [vmem:[%s954_s0 + $0x20] sm:$0xff]  ;;  %v87_v17 = vmul.f32 %v438_v1, %v19_v12  ;;  %v88_v18 = vmul.f32 %v438_v1, %v20_v13  ;;  %v89_v22 = vmul.f32 %v438_v1, %v21_v14  ;;  %v23_v28 = vld [vmem:[%s954_s0 + $0x48] sm:$0xff]  ;;  %v24_v29 = vld [vmem:[%s954_s0 + $0x50] sm:$0xff] }
   0x5   :  { %v86_v11 = vmul.f32 %v438_v1, %v18_v8  ;;  %v150_v15 = vadd.f32 %v443_v2, %v82_v4  ;;  %v151_v16 = vadd.f32 %v443_v2, %v83_v5  ;;  %v152_v19 = vadd.f32 %v443_v2, %v84_v9  ;;  %v22_v23 = vld [vmem:[%s954_s0 + $0x40] sm:$0xff]  ;;  %v25_v38 = vld [vmem:[%s954_s0 + $0x58] sm:$0xff]  ;;  %v27_v44 = vld [vmem:[%s954_s0 + $0x68] sm:$0xff] }
   0x6   :  { %v153_v20 = vadd.f32 %v443_v2, %v85_v10  ;;  %v155_v26 = vadd.f32 %v443_v2, %v87_v17  ;;  %v156_v27 = vadd.f32 %v443_v2, %v88_v18  ;;  %v157_v33 = vadd.f32 %v443_v2, %v89_v22  ;;  %v26_v39 = vld [vmem:[%s954_s0 + $0x60] sm:$0xff]  ;;  %v28_v45 = vld [vmem:[%s954_s0 + $0x70] sm:$0xff] }
   0x7   :  { %v154_v21 = vadd.f32 %v443_v2, %v86_v11  ;;  %v214_v24 = vmul.f32 0.1, %v150_v15  ;;  %v215_v25 = vmul.f32 0.1, %v151_v16  ;;  %v216_v30 = vmul.f32 0.1, %v152_v19 }
   0x8   :  { %v217_v31 = vmul.f32 0.1, %v153_v20  ;;  %v219_v36 = vmul.f32 0.1, %v155_v26  ;;  %v220_v37 = vmul.f32 0.1, %v156_v27  ;;  %v90_v48 = vmul.f32 %v438_v1, %v22_v23 }
   0x9   :  { %v218_v32 = vmul.f32 0.1, %v154_v21  ;;  %v278_v34 = vmax.f32 %v150_v15, %v214_v24  ;;  %v279_v35 = vmax.f32 %v151_v16, %v215_v25  ;;  %v280_v40 = vmax.f32 %v152_v19, %v216_v30 }
   0xa   :  { %v281_v41 = vmax.f32 %v153_v20, %v217_v31  ;;  %v221_v43 = vmul.f32 0.1, %v157_v33  ;;  %v283_v46 = vmax.f32 %v155_v26, %v219_v36  ;;  %v284_v47 = vmax.f32 %v156_v27, %v220_v37 }
   0xb   :  { %v282_v42 = vmax.f32 %v154_v21, %v218_v32  ;;  %342 = vst [vmem:[%s957_s3] sm:$0xff] %v278_v34  ;;  %v91_v49 = vmul.f32 %v438_v1, %v23_v28  ;;  %v92_v52 = vmul.f32 %v438_v1, %v24_v29  ;;  %v93_v53 = vmul.f32 %v438_v1, %v25_v38 }
   0xc   :  { %v285_v51 = vmax.f32 %v157_v33, %v221_v43  ;;  %v94_v54 = vmul.f32 %v438_v1, %v26_v39  ;;  %v158_v55 = vadd.f32 %v443_v2, %v90_v48  ;;  %v95_v57 = vmul.f32 %v438_v1, %v27_v44 }
   0xd   :  { %v159_v56 = vadd.f32 %v443_v2, %v91_v49  ;;  %v96_v58 = vmul.f32 %v438_v1, %v28_v45  ;;  %v160_v60 = vadd.f32 %v443_v2, %v92_v52  ;;  %v161_v61 = vadd.f32 %v443_v2, %v93_v53 }
   0xe   :  { %v162_v62 = vadd.f32 %v443_v2, %v94_v54  ;;  %v222_v3 = vmul.f32 0.1, %v158_v55  ;;  %v163_v5 = vadd.f32 %v443_v2, %v95_v57 }
   0xf   :  { %v223_v4 = vmul.f32 0.1, %v159_v56  ;;  %v164_v6 = vadd.f32 %v443_v2, %v96_v58  ;;  %v224_v8 = vmul.f32 0.1, %v160_v60  ;;  %v225_v9 = vmul.f32 0.1, %v161_v61 }
  0x10   :  { %v286_v13 = vmax.f32 %v158_v55, %v222_v3  ;;  %v226_v15 = vmul.f32 0.1, %v162_v62  ;;  %v227_v16 = vmul.f32 0.1, %v163_v5 }
  0x11   :  { %v287_v14 = vmax.f32 %v159_v56, %v223_v4  ;;  %v288_v18 = vmax.f32 %v160_v60, %v224_v8  ;;  %v289_v19 = vmax.f32 %v161_v61, %v225_v9  ;;  %v228_v20 = vmul.f32 0.1, %v164_v6 }
  0x12   :  { %v29_v50 = vld [vmem:[%s954_s0 + $0x78] sm:$0xff]  ;;  %v290_v23 = vmax.f32 %v162_v62, %v226_v15  ;;  %v291_v24 = vmax.f32 %v163_v5, %v227_v16 }
  0x13   :  { %343 = vst [vmem:[%s957_s3 + $0x8] sm:$0xff] %v279_v35  ;;  %v97_v63 = vmul.f32 %v438_v1, %v29_v50  ;;  %v292_v29 = vmax.f32 %v164_v6, %v228_v20 }
  0x14   :  { %344 = vst [vmem:[%s957_s3 + $0x10] sm:$0xff] %v280_v40 }
  0x15   :  { %v165_v10 = vadd.f32 %v443_v2, %v97_v63 }
  0x17   :  { %v229_v21 = vmul.f32 0.1, %v165_v10 }
  0x19   :  { %v293_v30 = vmax.f32 %v165_v10, %v229_v21 }
  0x1b   :  { %v30_v59 = vld [vmem:[%s954_s0 + $0x80] sm:$0xff] }
  0x1c   :  { %345 = vst [vmem:[%s957_s3 + $0x18] sm:$0xff] %v281_v41  ;;  %v98_v11 = vmul.f32 %v438_v1, %v30_v59 }
  0x1e   :  { %v166_v25 = vadd.f32 %v443_v2, %v98_v11 }
  0x20   :  { %v230_v33 = vmul.f32 0.1, %v166_v25 }
  0x23   :  { %v31_v0 = vld [vmem:[%s954_s0 + $0x88] sm:$0xff] }
  0x24   :  { %346 = vst [vmem:[%s957_s3 + $0x20] sm:$0xff] %v282_v42  ;;  %v99_v26 = vmul.f32 %v438_v1, %v31_v0  ;;  %v294_v42 = vmax.f32 %v166_v25, %v230_v33 }
  0x26   :  { %v167_v34 = vadd.f32 %v443_v2, %v99_v26 }
  0x28   :  { %v231_v43 = vmul.f32 0.1, %v167_v34 }
  0x2a   :  { %v295_v53 = vmax.f32 %v167_v34, %v231_v43 }
  0x2b   :  { %v32_v7 = vld [vmem:[%s954_s0 + $0x90] sm:$0xff] }
  0x2c   :  { %347 = vst [vmem:[%s957_s3 + $0x28] sm:$0xff] %v283_v46  ;;  %v100_v31 = vmul.f32 %v438_v1, %v32_v7 }
  0x2e   :  { %v168_v37 = vadd.f32 %v443_v2, %v100_v31 }
  0x30   :  { %v232_v48 = vmul.f32 0.1, %v168_v37 }
  0x32   :  { %v296_v58 = vmax.f32 %v168_v37, %v232_v48 }
  0x33   :  { %v33_v12 = vld [vmem:[%s954_s0 + $0x98] sm:$0xff] }
  0x34   :  { %348 = vst [vmem:[%s957_s3 + $0x30] sm:$0xff] %v284_v47  ;;  %v101_v32 = vmul.f32 %v438_v1, %v33_v12 }
  0x36   :  { %v169_v38 = vadd.f32 %v443_v2, %v101_v32 }
  0x38   :  { %v233_v49 = vmul.f32 0.1, %v169_v38 }
  0x3a   :  { %v297_v59 = vmax.f32 %v169_v38, %v233_v49 }
  0x3b   :  { %v34_v17 = vld [vmem:[%s954_s0 + $0xa0] sm:$0xff] }
  0x3c   :  { %349 = vst [vmem:[%s957_s3 + $0x38] sm:$0xff] %v285_v51  ;;  %v102_v35 = vmul.f32 %v438_v1, %v34_v17 }
  0x3e   :  { %v170_v44 = vadd.f32 %v443_v2, %v102_v35 }
  0x40   :  { %v234_v54 = vmul.f32 0.1, %v170_v44 }
  0x42   :  { %v298_v63 = vmax.f32 %v170_v44, %v234_v54 }
  0x43   :  { %v35_v22 = vld [vmem:[%s954_s0 + $0xa8] sm:$0xff] }
  0x44   :  { %350 = vst [vmem:[%s957_s3 + $0x40] sm:$0xff] %v286_v13  ;;  %v103_v36 = vmul.f32 %v438_v1, %v35_v22 }
  0x46   :  { %v171_v45 = vadd.f32 %v443_v2, %v103_v36 }
  0x48   :  { %v235_v55 = vmul.f32 0.1, %v171_v45 }
  0x4a   :  { %v299_v0 = vmax.f32 %v171_v45, %v235_v55 }
  0x4b   :  { %v36_v27 = vld [vmem:[%s954_s0 + $0xb0] sm:$0xff]  ;;  %v37_v28 = vld [vmem:[%s954_s0 + $0xb8] sm:$0xff] }
  0x4c   :  { %351 = vst [vmem:[%s957_s3 + $0x48] sm:$0xff] %v287_v14  ;;  %v104_v39 = vmul.f32 %v438_v1, %v36_v27  ;;  %v105_v40 = vmul.f32 %v438_v1, %v37_v28 }
  0x4d   :  { %352 = vst [vmem:[%s957_s3 + $0x50] sm:$0xff] %v288_v18 }
  0x4e   :  { %353 = vst [vmem:[%s957_s3 + $0x58] sm:$0xff] %v289_v19  ;;  %v172_v50 = vadd.f32 %v443_v2, %v104_v39  ;;  %v173_v51 = vadd.f32 %v443_v2, %v105_v40 }
  0x50   :  { %v236_v60 = vmul.f32 0.1, %v172_v50  ;;  %v237_v61 = vmul.f32 0.1, %v173_v51 }
  0x52   :  { %v300_v7 = vmax.f32 %v172_v50, %v236_v60  ;;  %v301_v8 = vmax.f32 %v173_v51, %v237_v61 }
  0x55   :  { %v38_v41 = vld [vmem:[%s954_s0 + $0xc0] sm:$0xff] }
  0x56   :  { %354 = vst [vmem:[%s957_s3 + $0x60] sm:$0xff] %v290_v23  ;;  %v106_v56 = vmul.f32 %v438_v1, %v38_v41 }
  0x58   :  { %v174_v3 = vadd.f32 %v443_v2, %v106_v56 }
  0x5a   :  { %v238_v11 = vmul.f32 0.1, %v174_v3 }
  0x5c   :  { %v302_v20 = vmax.f32 %v174_v3, %v238_v11 }
  0x5d   :  { %v39_v46 = vld [vmem:[%s954_s0 + $0xc8] sm:$0xff]  ;;  %v40_v47 = vld [vmem:[%s954_s0 + $0xd0] sm:$0xff] }
  0x5e   :  { %355 = vst [vmem:[%s957_s3 + $0x68] sm:$0xff] %v291_v24  ;;  %v107_v4 = vmul.f32 %v438_v1, %v39_v46  ;;  %v108_v9 = vmul.f32 %v438_v1, %v40_v47 }
  0x60   :  { %v175_v12 = vadd.f32 %v443_v2, %v107_v4  ;;  %v176_v15 = vadd.f32 %v443_v2, %v108_v9 }
  0x62   :  { %v239_v21 = vmul.f32 0.1, %v175_v12  ;;  %v240_v26 = vmul.f32 0.1, %v176_v15 }
  0x64   :  { %v303_v31 = vmax.f32 %v175_v12, %v239_v21  ;;  %v304_v36 = vmax.f32 %v176_v15, %v240_v26 }
  0x65   :  { %v41_v52 = vld [vmem:[%s954_s0 + $0xd8] sm:$0xff] }
  0x66   :  { %356 = vst [vmem:[%s957_s3 + $0x70] sm:$0xff] %v292_v29  ;;  %v109_v10 = vmul.f32 %v438_v1, %v41_v52 }
  0x68   :  { %v177_v16 = vadd.f32 %v443_v2, %v109_v10 }
  0x6a   :  { %v241_v27 = vmul.f32 0.1, %v177_v16 }
  0x6c   :  { %v305_v37 = vmax.f32 %v177_v16, %v241_v27 }
  0x6d   :  { %v42_v57 = vld [vmem:[%s954_s0 + $0xe0] sm:$0xff] }
  0x6e   :  { %357 = vst [vmem:[%s957_s3 + $0x78] sm:$0xff] %v293_v30  ;;  %v110_v13 = vmul.f32 %v438_v1, %v42_v57 }
  0x70   :  { %v178_v22 = vadd.f32 %v443_v2, %v110_v13 }
  0x72   :  { %v242_v32 = vmul.f32 0.1, %v178_v22 }
  0x74   :  { %v306_v41 = vmax.f32 %v178_v22, %v242_v32 }
  0x75   :  { %v43_v62 = vld [vmem:[%s954_s0 + $0xe8] sm:$0xff] }
  0x76   :  { %358 = vst [vmem:[%s957_s3 + $0x80] sm:$0xff] %v294_v42  ;;  %v111_v14 = vmul.f32 %v438_v1, %v43_v62 }
  0x78   :  { %v179_v23 = vadd.f32 %v443_v2, %v111_v14 }
  0x7a   :  { %v243_v33 = vmul.f32 0.1, %v179_v23 }
  0x7c   :  { %v307_v42 = vmax.f32 %v179_v23, %v243_v33 }
  0x7d   :  { %v44_v5 = vld [vmem:[%s954_s0 + $0xf0] sm:$0xff]  ;;  %v45_v6 = vld [vmem:[%s954_s0 + $0xf8] sm:$0xff] }
  0x7e   :  { %359 = vst [vmem:[%s957_s3 + $0x88] sm:$0xff] %v295_v53  ;;  %v112_v17 = vmul.f32 %v438_v1, %v44_v5  ;;  %v113_v18 = vmul.f32 %v438_v1, %v45_v6 }
  0x7f   :  { %360 = vst [vmem:[%s957_s3 + $0x90] sm:$0xff] %v296_v58 }
  0x80   :  { %361 = vst [vmem:[%s957_s3 + $0x98] sm:$0xff] %v297_v59  ;;  %v180_v28 = vadd.f32 %v443_v2, %v112_v17  ;;  %v181_v29 = vadd.f32 %v443_v2, %v113_v18 }
  0x82   :  { %v244_v38 = vmul.f32 0.1, %v180_v28  ;;  %v245_v39 = vmul.f32 0.1, %v181_v29 }
  0x84   :  { %v308_v47 = vmax.f32 %v180_v28, %v244_v38  ;;  %v309_v48 = vmax.f32 %v181_v29, %v245_v39 }
  0x87   :  { %v46_v19 = vld [vmem:[%s954_s0 + $0x100] sm:$0xff] }
  0x88   :  { %362 = vst [vmem:[%s957_s3 + $0xa0] sm:$0xff] %v298_v63  ;;  %v114_v34 = vmul.f32 %v438_v1, %v46_v19 }
  0x8a   :  { %v182_v43 = vadd.f32 %v443_v2, %v114_v34 }
  0x8c   :  { %v246_v51 = vmul.f32 0.1, %v182_v43 }
  0x8e   :  { %v310_v60 = vmax.f32 %v182_v43, %v246_v51 }
  0x8f   :  { %v47_v24 = vld [vmem:[%s954_s0 + $0x108] sm:$0xff]  ;;  %v48_v25 = vld [vmem:[%s954_s0 + $0x110] sm:$0xff] }
  0x90   :  { %363 = vst [vmem:[%s957_s3 + $0xa8] sm:$0xff] %v299_v0  ;;  %v115_v44 = vmul.f32 %v438_v1, %v47_v24  ;;  %v116_v49 = vmul.f32 %v438_v1, %v48_v25 }
  0x92   :  { %v183_v52 = vadd.f32 %v443_v2, %v115_v44  ;;  %v184_v55 = vadd.f32 %v443_v2, %v116_v49 }
  0x94   :  { %v247_v61 = vmul.f32 0.1, %v183_v52  ;;  %v248_v4 = vmul.f32 0.1, %v184_v55 }
  0x96   :  { %v311_v9 = vmax.f32 %v183_v52, %v247_v61  ;;  %v312_v14 = vmax.f32 %v184_v55, %v248_v4 }
  0x97   :  { %v49_v30 = vld [vmem:[%s954_s0 + $0x118] sm:$0xff] }
  0x98   :  { %364 = vst [vmem:[%s957_s3 + $0xb0] sm:$0xff] %v300_v7  ;;  %v117_v50 = vmul.f32 %v438_v1, %v49_v30 }
  0x9a   :  { %v185_v56 = vadd.f32 %v443_v2, %v117_v50 }
  0x9c   :  { %v249_v5 = vmul.f32 0.1, %v185_v56 }
  0x9e   :  { %v313_v15 = vmax.f32 %v185_v56, %v249_v5 }
  0x9f   :  { %v50_v35 = vld [vmem:[%s954_s0 + $0x120] sm:$0xff] }
  0xa0   :  { %365 = vst [vmem:[%s957_s3 + $0xb8] sm:$0xff] %v301_v8  ;;  %v118_v53 = vmul.f32 %v438_v1, %v50_v35 }
  0xa2   :  { %v186_v62 = vadd.f32 %v443_v2, %v118_v53 }
  0xa4   :  { %v250_v10 = vmul.f32 0.1, %v186_v62 }
  0xa6   :  { %v314_v19 = vmax.f32 %v186_v62, %v250_v10 }
  0xa7   :  { %v51_v40 = vld [vmem:[%s954_s0 + $0x128] sm:$0xff] }
  0xa8   :  { %366 = vst [vmem:[%s957_s3 + $0xc0] sm:$0xff] %v302_v20  ;;  %v119_v54 = vmul.f32 %v438_v1, %v51_v40 }
  0xaa   :  { %v187_v63 = vadd.f32 %v443_v2, %v119_v54 }
  0xac   :  { %v251_v11 = vmul.f32 0.1, %v187_v63 }
  0xae   :  { %v315_v20 = vmax.f32 %v187_v63, %v251_v11 }
  0xaf   :  { %v52_v45 = vld [vmem:[%s954_s0 + $0x130] sm:$0xff]  ;;  %v53_v46 = vld [vmem:[%s954_s0 + $0x138] sm:$0xff] }
  0xb0   :  { %367 = vst [vmem:[%s957_s3 + $0xc8] sm:$0xff] %v303_v31  ;;  %v120_v57 = vmul.f32 %v438_v1, %v52_v45  ;;  %v121_v58 = vmul.f32 %v438_v1, %v53_v46 }
  0xb1   :  { %368 = vst [vmem:[%s957_s3 + $0xd0] sm:$0xff] %v304_v36 }
  0xb2   :  { %369 = vst [vmem:[%s957_s3 + $0xd8] sm:$0xff] %v305_v37  ;;  %v188_v6 = vadd.f32 %v443_v2, %v120_v57  ;;  %v189_v7 = vadd.f32 %v443_v2, %v121_v58 }
  0xb4   :  { %v252_v16 = vmul.f32 0.1, %v188_v6  ;;  %v253_v17 = vmul.f32 0.1, %v189_v7 }
  0xb6   :  { %v316_v25 = vmax.f32 %v188_v6, %v252_v16  ;;  %v317_v26 = vmax.f32 %v189_v7, %v253_v17 }
  0xb9   :  { %v54_v59 = vld [vmem:[%s954_s0 + $0x140] sm:$0xff] }
  0xba   :  { %370 = vst [vmem:[%s957_s3 + $0xe0] sm:$0xff] %v306_v41  ;;  %v122_v12 = vmul.f32 %v438_v1, %v54_v59 }
  0xbc   :  { %v190_v21 = vadd.f32 %v443_v2, %v122_v12 }
  0xbe   :  { %v254_v29 = vmul.f32 0.1, %v190_v21 }
  0xc0   :  { %v318_v38 = vmax.f32 %v190_v21, %v254_v29 }
  0xc1   :  { %v55_v0 = vld [vmem:[%s954_s0 + $0x148] sm:$0xff]  ;;  %v56_v3 = vld [vmem:[%s954_s0 + $0x150] sm:$0xff] }
  0xc2   :  { %371 = vst [vmem:[%s957_s3 + $0xe8] sm:$0xff] %v307_v42  ;;  %v123_v22 = vmul.f32 %v438_v1, %v55_v0  ;;  %v124_v27 = vmul.f32 %v438_v1, %v56_v3 }
  0xc4   :  { %v191_v30 = vadd.f32 %v443_v2, %v123_v22  ;;  %v192_v33 = vadd.f32 %v443_v2, %v124_v27 }
  0xc6   :  { %v255_v39 = vmul.f32 0.1, %v191_v30  ;;  %v256_v44 = vmul.f32 0.1, %v192_v33 }
  0xc8   :  { %v319_v49 = vmax.f32 %v191_v30, %v255_v39  ;;  %v320_v54 = vmax.f32 %v192_v33, %v256_v44 }
  0xc9   :  { %v57_v8 = vld [vmem:[%s954_s0 + $0x158] sm:$0xff] }
  0xca   :  { %372 = vst [vmem:[%s957_s3 + $0xf0] sm:$0xff] %v308_v47  ;;  %v125_v28 = vmul.f32 %v438_v1, %v57_v8 }
  0xcc   :  { %v193_v34 = vadd.f32 %v443_v2, %v125_v28 }
  0xce   :  { %v257_v45 = vmul.f32 0.1, %v193_v34 }
  0xd0   :  { %v321_v55 = vmax.f32 %v193_v34, %v257_v45 }
  0xd1   :  { %v58_v13 = vld [vmem:[%s954_s0 + $0x160] sm:$0xff] }
  0xd2   :  { %373 = vst [vmem:[%s957_s3 + $0xf8] sm:$0xff] %v309_v48  ;;  %v126_v31 = vmul.f32 %v438_v1, %v58_v13 }
  0xd4   :  { %v194_v40 = vadd.f32 %v443_v2, %v126_v31 }
  0xd6   :  { %v258_v50 = vmul.f32 0.1, %v194_v40 }
  0xd8   :  { %v322_v59 = vmax.f32 %v194_v40, %v258_v50 }
  0xd9   :  { %v59_v18 = vld [vmem:[%s954_s0 + $0x168] sm:$0xff] }
  0xda   :  { %374 = vst [vmem:[%s957_s3 + $0x100] sm:$0xff] %v310_v60  ;;  %v127_v32 = vmul.f32 %v438_v1, %v59_v18 }
  0xdc   :  { %v195_v41 = vadd.f32 %v443_v2, %v127_v32 }
  0xde   :  { %v259_v51 = vmul.f32 0.1, %v195_v41 }
  0xe0   :  { %v323_v60 = vmax.f32 %v195_v41, %v259_v51 }
  0xe1   :  { %v60_v23 = vld [vmem:[%s954_s0 + $0x170] sm:$0xff]  ;;  %v61_v24 = vld [vmem:[%s954_s0 + $0x178] sm:$0xff] }
  0xe2   :  { %375 = vst [vmem:[%s957_s3 + $0x108] sm:$0xff] %v311_v9  ;;  %v128_v35 = vmul.f32 %v438_v1, %v60_v23  ;;  %v129_v36 = vmul.f32 %v438_v1, %v61_v24 }
  0xe3   :  { %376 = vst [vmem:[%s957_s3 + $0x110] sm:$0xff] %v312_v14 }
  0xe4   :  { %377 = vst [vmem:[%s957_s3 + $0x118] sm:$0xff] %v313_v15  ;;  %v196_v46 = vadd.f32 %v443_v2, %v128_v35  ;;  %v197_v47 = vadd.f32 %v443_v2, %v129_v36 }
  0xe6   :  { %v260_v56 = vmul.f32 0.1, %v196_v46  ;;  %v261_v57 = vmul.f32 0.1, %v197_v47 }
  0xe8   :  { %v324_v3 = vmax.f32 %v196_v46, %v260_v56  ;;  %v325_v4 = vmax.f32 %v197_v47, %v261_v57 }
  0xeb   :  { %v62_v37 = vld [vmem:[%s954_s0 + $0x180] sm:$0xff] }
  0xec   :  { %378 = vst [vmem:[%s957_s3 + $0x120] sm:$0xff] %v314_v19  ;;  %v130_v52 = vmul.f32 %v438_v1, %v62_v37 }
  0xee   :  { %v198_v61 = vadd.f32 %v443_v2, %v130_v52 }
  0xf0   :  { %v262_v7 = vmul.f32 0.1, %v198_v61 }
  0xf2   :  { %v326_v16 = vmax.f32 %v198_v61, %v262_v7 }
  0xf3   :  { %v63_v42 = vld [vmem:[%s954_s0 + $0x188] sm:$0xff]  ;;  %v64_v43 = vld [vmem:[%s954_s0 + $0x190] sm:$0xff] }
  0xf4   :  { %379 = vst [vmem:[%s957_s3 + $0x128] sm:$0xff] %v315_v20  ;;  %v131_v62 = vmul.f32 %v438_v1, %v63_v42  ;;  %v132_v5 = vmul.f32 %v438_v1, %v64_v43 }
  0xf6   :  { %v199_v8 = vadd.f32 %v443_v2, %v131_v62  ;;  %v200_v11 = vadd.f32 %v443_v2, %v132_v5 }
  0xf8   :  { %v263_v17 = vmul.f32 0.1, %v199_v8  ;;  %v264_v22 = vmul.f32 0.1, %v200_v11 }
  0xfa   :  { %v327_v27 = vmax.f32 %v199_v8, %v263_v17  ;;  %v328_v32 = vmax.f32 %v200_v11, %v264_v22 }
  0xfb   :  { %v65_v48 = vld [vmem:[%s954_s0 + $0x198] sm:$0xff] }
  0xfc   :  { %380 = vst [vmem:[%s957_s3 + $0x130] sm:$0xff] %v316_v25  ;;  %v133_v6 = vmul.f32 %v438_v1, %v65_v48 }
  0xfe   :  { %v201_v12 = vadd.f32 %v443_v2, %v133_v6 }
 0x100   :  { %v265_v23 = vmul.f32 0.1, %v201_v12 }
 0x102   :  { %v329_v33 = vmax.f32 %v201_v12, %v265_v23 }
 0x103   :  { %v66_v53 = vld [vmem:[%s954_s0 + $0x1a0] sm:$0xff] }
 0x104   :  { %381 = vst [vmem:[%s957_s3 + $0x138] sm:$0xff] %v317_v26  ;;  %v134_v9 = vmul.f32 %v438_v1, %v66_v53 }
 0x106   :  { %v202_v18 = vadd.f32 %v443_v2, %v134_v9 }
 0x108   :  { %v266_v28 = vmul.f32 0.1, %v202_v18 }
 0x10a   :  { %v330_v37 = vmax.f32 %v202_v18, %v266_v28 }
 0x10b   :  { %v67_v58 = vld [vmem:[%s954_s0 + $0x1a8] sm:$0xff] }
 0x10c   :  { %382 = vst [vmem:[%s957_s3 + $0x140] sm:$0xff] %v318_v38  ;;  %v135_v10 = vmul.f32 %v438_v1, %v67_v58 }
 0x10e   :  { %v203_v19 = vadd.f32 %v443_v2, %v135_v10 }
 0x110   :  { %v267_v29 = vmul.f32 0.1, %v203_v19 }
 0x112   :  { %v331_v38 = vmax.f32 %v203_v19, %v267_v29 }
 0x113   :  { %v68_v63 = vld [vmem:[%s954_s0 + $0x1b0] sm:$0xff]  ;;  %v69_v0 = vld [vmem:[%s954_s0 + $0x1b8] sm:$0xff] }
 0x114   :  { %383 = vst [vmem:[%s957_s3 + $0x148] sm:$0xff] %v319_v49  ;;  %v136_v13 = vmul.f32 %v438_v1, %v68_v63  ;;  %v137_v14 = vmul.f32 %v438_v1, %v69_v0 }
 0x115   :  { %384 = vst [vmem:[%s957_s3 + $0x150] sm:$0xff] %v320_v54 }
 0x116   :  { %385 = vst [vmem:[%s957_s3 + $0x158] sm:$0xff] %v321_v55  ;;  %v204_v24 = vadd.f32 %v443_v2, %v136_v13  ;;  %v205_v25 = vadd.f32 %v443_v2, %v137_v14 }
 0x118   :  { %v268_v34 = vmul.f32 0.1, %v204_v24  ;;  %v269_v35 = vmul.f32 0.1, %v205_v25 }
 0x11a   :  { %v332_v43 = vmax.f32 %v204_v24, %v268_v34  ;;  %v333_v44 = vmax.f32 %v205_v25, %v269_v35 }
 0x11d   :  { %v70_v15 = vld [vmem:[%s954_s0 + $0x1c0] sm:$0xff] }
 0x11e   :  { %386 = vst [vmem:[%s957_s3 + $0x160] sm:$0xff] %v322_v59  ;;  %v138_v30 = vmul.f32 %v438_v1, %v70_v15 }
 0x120   :  { %v206_v39 = vadd.f32 %v443_v2, %v138_v30 }
 0x122   :  { %v270_v47 = vmul.f32 0.1, %v206_v39 }
 0x124   :  { %v334_v55 = vmax.f32 %v206_v39, %v270_v47 }
 0x125   :  { %v71_v20 = vld [vmem:[%s954_s0 + $0x1c8] sm:$0xff]  ;;  %v72_v21 = vld [vmem:[%s954_s0 + $0x1d0] sm:$0xff] }
 0x126   :  { %387 = vst [vmem:[%s957_s3 + $0x168] sm:$0xff] %v323_v60  ;;  %v139_v40 = vmul.f32 %v438_v1, %v71_v20  ;;  %v140_v45 = vmul.f32 %v438_v1, %v72_v21 }
 0x128   :  { %v207_v48 = vadd.f32 %v443_v2, %v139_v40  ;;  %v208_v51 = vadd.f32 %v443_v2, %v140_v45 }
 0x12a   :  { %v271_v56 = vmul.f32 0.1, %v207_v48  ;;  %v272_v59 = vmul.f32 0.1, %v208_v51 }
 0x12c   :  { %v335_v62 = vmax.f32 %v207_v48, %v271_v56 }
 0x12d   :  { %v73_v26 = vld [vmem:[%s954_s0 + $0x1d8] sm:$0xff] }
 0x12e   :  { %388 = vst [vmem:[%s957_s3 + $0x170] sm:$0xff] %v324_v3  ;;  %v141_v46 = vmul.f32 %v438_v1, %v73_v26  ;;  %v336_v3 = vmax.f32 %v208_v51, %v272_v59 }
 0x130   :  { %v209_v52 = vadd.f32 %v443_v2, %v141_v46 }
 0x132   :  { %v273_v60 = vmul.f32 0.1, %v209_v52 }
 0x135   :  { %v74_v31 = vld [vmem:[%s954_s0 + $0x1e0] sm:$0xff] }
 0x136   :  { %389 = vst [vmem:[%s957_s3 + $0x178] sm:$0xff] %v325_v4  ;;  %v142_v49 = vmul.f32 %v438_v1, %v74_v31  ;;  %v337_v4 = vmax.f32 %v209_v52, %v273_v60 }
 0x138   :  { %v210_v57 = vadd.f32 %v443_v2, %v142_v49 }
 0x13a   :  { %v274_v63 = vmul.f32 0.1, %v210_v57 }
 0x13d   :  { %v75_v36 = vld [vmem:[%s954_s0 + $0x1e8] sm:$0xff] }
 0x13e   :  { %390 = vst [vmem:[%s957_s3 + $0x180] sm:$0xff] %v326_v16  ;;  %v143_v50 = vmul.f32 %v438_v1, %v75_v36 }
 0x140   :  { %v211_v58 = vadd.f32 %v443_v2, %v143_v50 }
 0x142   :  { %v275_v0 = vmul.f32 0.1, %v211_v58 }
 0x144   :  { %v339_v7 = vmax.f32 %v211_v58, %v275_v0 }
 0x145   :  { %v76_v41 = vld [vmem:[%s954_s0 + $0x1f0] sm:$0xff]  ;;  %v77_v42 = vld [vmem:[%s954_s0 + $0x1f8] sm:$0xff] }
 0x146   :  { %391 = vst [vmem:[%s957_s3 + $0x188] sm:$0xff] %v327_v27  ;;  %v144_v53 = vmul.f32 %v438_v1, %v76_v41  ;;  %v145_v54 = vmul.f32 %v438_v1, %v77_v42 }
 0x147   :  { %392 = vst [vmem:[%s957_s3 + $0x190] sm:$0xff] %v328_v32 }
 0x148   :  { %393 = vst [vmem:[%s957_s3 + $0x198] sm:$0xff] %v329_v33  ;;  %v212_v61 = vadd.f32 %v443_v2, %v144_v53  ;;  %v213_v1 = vadd.f32 %v443_v2, %v145_v54  ;;  %v338_v2 = vmax.f32 %v210_v57, %v274_v63 }
 0x149   :  { %394 = vst [vmem:[%s957_s3 + $0x1a0] sm:$0xff] %v330_v37 }
 0x14a   :  { %395 = vst [vmem:[%s957_s3 + $0x1a8] sm:$0xff] %v331_v38  ;;  %v276_v5 = vmul.f32 0.1, %v212_v61  ;;  %v277_v6 = vmul.f32 0.1, %v213_v1 }
 0x14b   :  { %396 = vst [vmem:[%s957_s3 + $0x1b0] sm:$0xff] %v332_v43 }
 0x14c   :  { %397 = vst [vmem:[%s957_s3 + $0x1b8] sm:$0xff] %v333_v44  ;;  %v340_v8 = vmax.f32 %v212_v61, %v276_v5  ;;  %v341_v9 = vmax.f32 %v213_v1, %v277_v6 }
 0x14d   :  { %398 = vst [vmem:[%s957_s3 + $0x1c0] sm:$0xff] %v334_v55 }
 0x14e   :  { %399 = vst [vmem:[%s957_s3 + $0x1c8] sm:$0xff] %v335_v62 }
 0x14f   :  { %400 = vst [vmem:[%s957_s3 + $0x1d0] sm:$0xff] %v336_v3 }
 0x150   :  { %401 = vst [vmem:[%s957_s3 + $0x1d8] sm:$0xff] %v337_v4 }
 0x151   :  { %402 = vst [vmem:[%s957_s3 + $0x1e0] sm:$0xff] %v338_v2 }
 0x152   :  { %403 = vst [vmem:[%s957_s3 + $0x1e8] sm:$0xff] %v339_v7 }
 0x153   :  { %404 = vst [vmem:[%s957_s3 + $0x1f0] sm:$0xff] %v340_v8 }
 0x154   :  { %405 = vst [vmem:[%s957_s3 + $0x1f8] sm:$0xff] %v341_v9 }

// kernel: cnn_block_forward.2
= control target key start
LH: loop header
LB: loop body
LE: loop exit
PB: predicated region body
PF: predicated region fallthrough
CT: control target
= control target key end

     0   :  { %s2924_s15 = smov 0   ;;  %s2926_s16 = smov 0   ;;  %s3915_s0 = inlined_call_operand.vmem [shape: f32[2,18,18,8], index: 0, kind: input, shape index: {}]   ;;  %s3916_s1 = inlined_call_operand.vmem [shape: bf16[3,3,8,128], index: 1, kind: input, shape index: {}]   ;;  %s3917_s2 = inlined_call_operand.vmem [shape: f32[2,256,128], index: 2, kind: output, shape index: {0}]   ;;  %s3918_s3 = inlined_call_operand.vmem [shape: f32[1,128], index: 3, kind: output, shape index: {1}]   ;;  %s3919_s4 = inlined_call_operand.vmem [shape: f32[1,128], index: 4, kind: output, shape index: {2}]  }
   0x1   :  { %s2928_s17 = smov 0  }
   0x2 LB: > { %s24_s18 = sadd.s32 1, %s2892_s16  ;;  %p2490_p0 = scmp.ge.s32.totalorder %s2896_s17, 1  ;;  %s2896_s17 = sphi %s2928_s17, %s15_s17   ;;  %s2892_s16 = sphi %s2926_s16, %s3963_s16   ;;  %s2888_s15 = sphi %s2924_s15, %s3962_s15  }
   0x3   : > { %p25_p1 = scmp.ge.s32.totalorder %s24_s18, 2  ;;  %p190_p2 = scmp.lt.s32.totalorder %s2896_s17, 3 }
   0x5   : > { %s3965_s18 = smov (%p25_p1, %s24_s18), 0  ;;  %p191_p3 = pnand %p2490_p0, %p190_p2 }
   0x7   : > { %194 = sbr.rel (%p191_p3) target bundleno = 820 (0x334), region = 28 }
   0xc   : > { %v2494_v0 = vld [vmem:[%s3916_s1 + $0x4] sm:$0xf]  ;;  %vm401_vm0 = vcmask 1043456   ;;  %p229_p4 = scmp.lt.s32.totalorder %s2888_s15, 1  ;;  %v2527_v2 = vld [vmem:[%s3916_s1 + $0x8] sm:$0xf] }
   0xd   : > { %v403_v1 = vsel %vm401_vm0, %v2494_v0, 0  ;;  %v2576_v3 = vld [vmem:[%s3916_s1 + $0xc] sm:$0xf]  ;;  %v733_v4 = vsel %vm401_vm0, %v2527_v2, 0  ;;  %v301_v6 = vld [vmem:[%s3916_s1] sm:$0xf] }
   0xe   : > { %2845 = vmatpush.bf16.msra.mxu1 %v403_v1  ;;  %2846 = vmatpush.bf16.msra.mxu2 %v403_v1  ;;  %s2956_s25 = scalar_select %p229_p4, %s2888_s15, 1  ;;  %v956_v5 = vsel %vm401_vm0, %v2576_v3, 0  ;;  %v543_v7 = vsel %vm401_vm0, %v301_v6, 0  ;;  %v2625_v8 = vld [vmem:[%s3916_s1 + $0x10] sm:$0xf]  ;;  %vm352_vm1 = vcmask 64512  }
   0xf   : > { %2847 = vmatpush.bf16.msra.mxu3 %v403_v1  ;;  %412 = vmatpush.bf16.msra.mxu0 %v403_v1  ;;  %v1178_v9 = vsel %vm401_vm0, %v2625_v8, 0  ;;  %v2723_v46 = vld [vmem:[%s3916_s1 + $0x18] sm:$0xf]  ;;  %v2772_v48 = vld [vmem:[%s3916_s1 + $0x1c] sm:$0xf]  ;;  %p2838_p5 = scmp.ne.s32.totalorder %s2888_s15, 0 }
  0x10   : > { %s2848_s30 = smul.u32 432, %s2956_s25  ;;  %v1623_v47 = vsel %vm401_vm0, %v2723_v46, 0  ;;  %v2674_v49 = vld [vmem:[%s3916_s1 + $0x14] sm:$0xf]  ;;  %v1845_v50 = vsel %vm401_vm0, %v2772_v48, 0  ;;  %s2844_s20 = sshll.u32 %s2956_s25, 8 }
  0x11   : > { %v1400_v51 = vsel %vm401_vm0, %v2674_v49, 0  ;;  %v2821_v52 = vld [vmem:[%s3916_s1 + $0x20] sm:$0xf]  ;;  %s3577_s23 = scalar_lea.vmem %s3917_s2, %s2844_s20 }
  0x12   : > { %742 = vmatpush.bf16.msrb.mxu2 %v733_v4  ;;  %552 = vmatpush.bf16.msrb.mxu1 %v543_v7  ;;  %s2972_s7 = scalar_lea.vmem %s3915_s0, %s2848_s30  ;;  %v2067_v53 = vsel %vm401_vm0, %v2821_v52, 0 }
  0x13   : > { %965 = vmatpush.bf16.msrb.mxu3 %v956_v5  ;;  %1187 = vmatpush.bf16.msrb.mxu0 %v1178_v9  ;;  %v310_v10 = vld [vmem:[%s2972_s7 + $0x61] sm:$0xff]  ;;  %v311_v11 = vld [vmem:[%s2972_s7 + $0x69] sm:$0xff]  ;;  %v312_v22 = vld [vmem:[%s2972_s7 + $0x79] sm:$0xff] }
  0x14   : > { %v318_v12 = vld [vmem:[%s2972_s7 + $0xc1] sm:$0xff]  ;;  %v2977_v13 = vpack.c.bf16 %v311_v11, %v310_v10  ;;  %v319_v14 = vld [vmem:[%s2972_s7 + $0xc9] sm:$0xff]  ;;  %v320_v24 = vld [vmem:[%s2972_s7 + $0xd9] sm:$0xff] }
  0x15   : > { %v326_v15 = vld [vmem:[%s2972_s7 + $0x121] sm:$0xff]  ;;  %v327_v16 = vld [vmem:[%s2972_s7 + $0x129] sm:$0xff]  ;;  %v2982_v17 = vpack.c.bf16 %v319_v14, %v318_v12  ;;  %v328_v26 = vld [vmem:[%s2972_s7 + $0x139] sm:$0xff] }
  0x16   : > { %v2984_v18 = vpack.c.bf16 %v327_v16, %v326_v15  ;;  %v302_v19 = vld [vmem:[%s2972_s7 + $0x1] sm:$0xff]  ;;  %v303_v20 = vld [vmem:[%s2972_s7 + $0x9] sm:$0xff]  ;;  %2499 = vmatmul.msk.bf16.vlgmr.msra.gmra.mxu1 %vm352_vm1, %v2977_v13  ;;  %v304_v28 = vld [vmem:[%s2972_s7 + $0x19] sm:$0xff] }
  0x17   : > { %v334_v21 = vpack.c.bf16 %v303_v20, %v302_v19  ;;  %2503 = vmatmul.msk.bf16.vlgmr.msra.gmra.mxu2 %vm352_vm1, %v2982_v17  ;;  %v313_v23 = vld [vmem:[%s2972_s7 + $0x81] sm:$0xff]  ;;  %v314_v34 = vld [vmem:[%s2972_s7 + $0x91] sm:$0xff]  ;;  %v315_v35 = vld [vmem:[%s2972_s7 + $0x99] sm:$0xff]  ;;  %1409 = vmatpush.bf16.msra.mxu1 %v1400_v51 }
  0x18   : > { %2507 = vmatmul.msk.bf16.vlgmr.msra.gmra.mxu3 %vm352_vm1, %v2984_v18  ;;  %v321_v25 = vld [vmem:[%s2972_s7 + $0xe1] sm:$0xff]  ;;  %v3003_v30 = vpack.c.bf16 %v313_v23, %v312_v22  ;;  %v322_v36 = vld [vmem:[%s2972_s7 + $0xf1] sm:$0xff]  ;;  %v323_v37 = vld [vmem:[%s2972_s7 + $0xf9] sm:$0xff]  ;;  %v3024_v42 = vpack.c.bf16 %v315_v35, %v314_v34  ;;  %1632 = vmatpush.bf16.msra.mxu2 %v1623_v47 }
  0x19   : > { %2495 = vmatmul.msk.bf16.vlgmr.msra.gmra.mxu0 %vm352_vm1, %v334_v21  ;;  %v329_v27 = vld [vmem:[%s2972_s7 + $0x141] sm:$0xff]  ;;  %v3005_v31 = vpack.c.bf16 %v321_v25, %v320_v24  ;;  %v330_v38 = vld [vmem:[%s2972_s7 + $0x151] sm:$0xff]  ;;  %v331_v39 = vld [vmem:[%s2972_s7 + $0x159] sm:$0xff]  ;;  %v3026_v43 = vpack.c.bf16 %v323_v37, %v322_v36  ;;  %1854 = vmatpush.bf16.msra.mxu3 %v1845_v50 }
  0x1a   : > { %v305_v29 = vld [vmem:[%s2972_s7 + $0x21] sm:$0xff]  ;;  %v3007_v32 = vpack.c.bf16 %v329_v27, %v328_v26  ;;  %v306_v40 = vld [vmem:[%s2972_s7 + $0x31] sm:$0xff]  ;;  %v307_v41 = vld [vmem:[%s2972_s7 + $0x39] sm:$0xff]  ;;  %v3028_v44 = vpack.c.bf16 %v331_v39, %v330_v38  ;;  %2076 = vmatpush.bf16.msra.mxu0 %v2067_v53 }
  0x1b   : > { %v335_v33 = vpack.c.bf16 %v305_v29, %v304_v28  ;;  %v3030_v45 = vpack.c.bf16 %v307_v41, %v306_v40  ;;  %v316_v54 = vld [vmem:[%s2972_s7 + $0xa9] sm:$0xff]  ;;  %v317_v55 = vld [vmem:[%s2972_s7 + $0xb1] sm:$0xff]  ;;  %v253_v2 = vld [vmem:[%s2972_s7] sm:$0xff] }
  0x1c   : > { %v324_v56 = vld [vmem:[%s2972_s7 + $0x109] sm:$0xff]  ;;  %v325_v57 = vld [vmem:[%s2972_s7 + $0x111] sm:$0xff]  ;;  %v3064_v62 = vpack.c.bf16 %v317_v55, %v316_v54  ;;  %v2545_v7 = vld [vmem:[%s2972_s7 + $0x20] sm:$0xff] }
  0x1d   : > { %v332_v58 = vld [vmem:[%s2972_s7 + $0x169] sm:$0xff]  ;;  %v333_v59 = vld [vmem:[%s2972_s7 + $0x171] sm:$0xff]  ;;  %v3066_v63 = vpack.c.bf16 %v325_v57, %v324_v56  ;;  %v636_v11 = vld [vmem:[%s2972_s7 + $0x1a] sm:$0xff] }
  0x1e   : > { %v308_v60 = vld [vmem:[%s2972_s7 + $0x49] sm:$0xff]  ;;  %v309_v61 = vld [vmem:[%s2972_s7 + $0x51] sm:$0xff]  ;;  %v3068_v0 = vpack.c.bf16 %v333_v59, %v332_v58  ;;  %v639_v21 = vld [vmem:[%s2972_s7 + $0x3a] sm:$0xff] }
  0x1f   : > { %v3070_v1 = vpack.c.bf16 %v309_v61, %v308_v60  ;;  %v254_v3 = vld [vmem:[%s2972_s7 + $0x8] sm:$0xff]  ;;  %v2544_v6 = vld [vmem:[%s2972_s7 + $0x18] sm:$0xff]  ;;  %v2546_v14 = vld [vmem:[%s2972_s7 + $0x30] sm:$0xff] }
  0x20   : > { %v634_v4 = vld [vmem:[%s2972_s7 + $0x2] sm:$0xff]  ;;  %v635_v5 = vld [vmem:[%s2972_s7 + $0xa] sm:$0xff]  ;;  %v285_v8 = vpack.c.bf16 %v254_v3, %v253_v2  ;;  %v889_v10 = vpack.c.bf16 %v2545_v7, %v2544_v6  ;;  %v2547_v15 = vld [vmem:[%s2972_s7 + $0x38] sm:$0xff] }
  0x21   : > { %v666_v9 = vpack.c.bf16 %v635_v5, %v634_v4  ;;  %v637_v12 = vld [vmem:[%s2972_s7 + $0x22] sm:$0xff]  ;;  %v3096_v19 = vpack.c.bf16 %v2547_v15, %v2546_v14  ;;  %v638_v20 = vld [vmem:[%s2972_s7 + $0x32] sm:$0xff]  ;;  %v640_v26 = vld [vmem:[%s2972_s7 + $0x4a] sm:$0xff] }
  0x22   : > { %v3094_v16 = vpack.c.bf16 %v637_v12, %v636_v11  ;;  %v2548_v22 = vld [vmem:[%s2972_s7 + $0x48] sm:$0xff]  ;;  %v2549_v23 = vld [vmem:[%s2972_s7 + $0x50] sm:$0xff]  ;;  %v3109_v24 = vpack.c.bf16 %v639_v21, %v638_v20  ;;  %v2550_v28 = vld [vmem:[%s2972_s7 + $0x60] sm:$0xff] }
  0x23   : > { %v3111_v25 = vpack.c.bf16 %v2549_v23, %v2548_v22  ;;  %v641_v27 = vld [vmem:[%s2972_s7 + $0x52] sm:$0xff]  ;;  %v2551_v29 = vld [vmem:[%s2972_s7 + $0x68] sm:$0xff]  ;;  %v2553_v38 = vld [vmem:[%s2972_s7 + $0x80] sm:$0xff] }
  0x24   : > { %v3127_v34 = vpack.c.bf16 %v2551_v29, %v2550_v28  ;;  %v642_v35 = vld [vmem:[%s2972_s7 + $0x62] sm:$0xff]  ;;  %v643_v36 = vld [vmem:[%s2972_s7 + $0x6a] sm:$0xff]  ;;  %v2552_v37 = vld [vmem:[%s2972_s7 + $0x78] sm:$0xff] }
  0x25   : > { %v3143_v40 = vpack.c.bf16 %v643_v36, %v642_v35  ;;  %v3145_v41 = vpack.c.bf16 %v2553_v38, %v2552_v37  ;;  %v644_v50 = vld [vmem:[%s2972_s7 + $0x7a] sm:$0xff]  ;;  %v645_v51 = vld [vmem:[%s2972_s7 + $0x82] sm:$0xff]  ;;  %v2554_v52 = vld [vmem:[%s2972_s7 + $0x90] sm:$0xff] }
  0x26   : > { %2500 = vmatmul.msk.bf16.gmra.mxu1 %vm352_vm1, %v3003_v30  ;;  %v2555_v53 = vld [vmem:[%s2972_s7 + $0x98] sm:$0xff]  ;;  %v3175_v56 = vpack.c.bf16 %v645_v51, %v644_v50  ;;  %v2556_v5 = vld [vmem:[%s2972_s7 + $0xa8] sm:$0xff]  ;;  %v2557_v6 = vld [vmem:[%s2972_s7 + $0xb0] sm:$0xff] }
  0x27   : > { %2504 = vmatmul.msk.bf16.gmra.mxu2 %vm352_vm1, %v3005_v31  ;;  %v3177_v57 = vpack.c.bf16 %v2555_v53, %v2554_v52  ;;  %v646_v3 = vld [vmem:[%s2972_s7 + $0x92] sm:$0xff]  ;;  %v647_v4 = vld [vmem:[%s2972_s7 + $0x9a] sm:$0xff]  ;;  %v648_v21 = vld [vmem:[%s2972_s7 + $0xaa] sm:$0xff] }
  0x28   : > { %2508 = vmatmul.msk.bf16.gmra.mxu3 %vm352_vm1, %v3007_v32  ;;  %v649_v22 = vld [vmem:[%s2972_s7 + $0xb2] sm:$0xff]  ;;  %v2558_v23 = vld [vmem:[%s2972_s7 + $0xc0] sm:$0xff]  ;;  %v651_v53 = vld [vmem:[%s2972_s7 + $0xca] sm:$0xff] }
  0x29   : > { %2496 = vmatmul.msk.bf16.gmra.mxu0 %vm352_vm1, %v335_v33  ;;  %v3239_v29 = vpack.c.bf16 %v649_v22, %v648_v21  ;;  %v650_v52 = vld [vmem:[%s2972_s7 + $0xc2] sm:$0xff] }
  0x2a   : > { %v3269_v22 = vpack.c.bf16 %v651_v53, %v650_v52 }
  0x2b   : > { %3932 = vst [vmem:[#allocation10_spill] sm:$0xff] %v3239_v29 }
  0x2c   : > { %3936 = vst [vmem:[#allocation14_spill] sm:$0xff] %v3269_v22 }
  0x36   : > { %2501 = vmatmul.msk.bf16.gmra.mxu1 %vm352_vm1, %v3024_v42 }
  0x37   : > { %2505 = vmatmul.msk.bf16.gmra.mxu2 %vm352_vm1, %v3026_v43 }
  0x38   : > { %2509 = vmatmul.msk.bf16.gmra.mxu3 %vm352_vm1, %v3028_v44 }
  0x39   : > { %2497 = vmatmul.msk.bf16.gmra.mxu0 %vm352_vm1, %v3030_v45 }
  0x46   : > { %2502 = vmatmul.msk.bf16.gmra.mxu1 %vm352_vm1, %v3064_v62 }
  0x47   : > { %2506 = vmatmul.msk.bf16.gmra.mxu2 %vm352_vm1, %v3066_v63 }
  0x48   : > { %2510 = vmatmul.msk.bf16.gmra.mxu3 %vm352_vm1, %v3068_v0 }
  0x49   : > { %2498 = vmatmul.msk.bf16.gmra.mxu0 %vm352_vm1, %v3070_v1 }
  0x56   : > { %2511 = vmatmul.msk.bf16.vlgmr.msrb.gmra.mxu1 %vm352_vm1, %v285_v8 }
  0x57   : > { %2528 = vmatmul.msk.bf16.vlgmr.msrb.gmra.mxu2 %vm352_vm1, %v666_v9  ;;  %v3207_v9 = vpack.c.bf16 %v647_v4, %v646_v3  ;;  %v2560_v3 = vld [vmem:[%s2972_s7 + $0xd8] sm:$0xff]  ;;  %v2561_v4 = vld [vmem:[%s2972_s7 + $0xe0] sm:$0xff] }
  0x58   : > { %2577 = vmatmul.msk.bf16.vlgmr.msrb.gmra.mxu3 %vm352_vm1, %v889_v10 }
  0x59   : > { %2626 = vmatmul.msk.bf16.vlgmr.msrb.gmra.mxu0 %vm352_vm1, %v335_v33  ;;  %v3125_v33 = vpack.c.bf16 %v641_v27, %v640_v26  ;;  %v2559_v26 = vld [vmem:[%s2972_s7 + $0xc8] sm:$0xff] }
  0x5a   : > { %v3241_v35 = vpack.c.bf16 %v2559_v26, %v2558_v23 }
  0x5c   : > { %3933 = vst [vmem:[#allocation11_spill] sm:$0xff] %v3241_v35 }
  0x66   : > { %2512 = vmatmul.msk.bf16.gmra.mxu1 %vm352_vm1, %v889_v10  ;;  %v3209_v10 = vpack.c.bf16 %v2557_v6, %v2556_v5 }
  0x67   : > { %2529 = vmatmul.msk.bf16.gmra.mxu2 %vm352_vm1, %v3094_v16 }
  0x68   : > { %2578 = vmatmul.msk.bf16.gmra.mxu3 %vm352_vm1, %v3096_v19  ;;  %3929 = vst [vmem:[#allocation7_spill] sm:$0xff] %v3209_v10 }
  0x69   : > { %2627 = vmatmul.msk.bf16.gmra.mxu0 %vm352_vm1, %v3030_v45 }
  0x76   : > { %2513 = vmatmul.msk.bf16.gmra.mxu1 %vm352_vm1, %v3096_v19 }
  0x77   : > { %2530 = vmatmul.msk.bf16.gmra.mxu2 %vm352_vm1, %v3109_v24 }
  0x78   : > { %2579 = vmatmul.msk.bf16.gmra.mxu3 %vm352_vm1, %v3111_v25 }
  0x79   : > { %2628 = vmatmul.msk.bf16.gmra.mxu0 %vm352_vm1, %v3070_v1 }
  0x86   : > { %2514 = vmatmul.msk.bf16.gmra.mxu1 %vm352_vm1, %v3111_v25 }
  0x87   : > { %2531 = vmatmul.msk.bf16.gmra.mxu2 %vm352_vm1, %v3125_v33 }
  0x88   : > { %2580 = vmatmul.msk.bf16.gmra.mxu3 %vm352_vm1, %v3127_v34 }
  0x89   : > { %2629 = vmatmul.msk.bf16.gmra.mxu0 %vm352_vm1, %v2977_v13 }
  0x93   : > { %v3141_v39 = vpop.f32.mrf.mxu1 }
  0x96   : > { %v3147_v46 = vpop.f32.mrf.mxu0  ;;  %2515 = vmatmul.msk.bf16.gmra.mxu1 %vm352_vm1, %v3127_v34 }
  0x97   : > { %2532 = vmatmul.msk.bf16.gmra.mxu2 %vm352_vm1, %v3143_v40 }
  0x98   : > { %2581 = vmatmul.msk.bf16.gmra.mxu3 %vm352_vm1, %v3145_v41 }
  0x99   : > { %2630 = vmatmul.msk.bf16.gmra.mxu0 %vm352_vm1, %v3003_v30 }
  0x9a   : > { %v3157_v13 = vpop.f32.mrf.mxu2 }
  0x9b   : > { %v3159_v47 = vpop.f32.mrf.mxu3  ;;  %v3161_v48 = vpop.f32.mrf.mxu1 }
  0x9e   : > { %v3163_v49 = vpop.f32.mrf.mxu0 }
  0xa2   : > { %v3169_v54 = vpop.f32.mrf.mxu2 }
  0xa3   : > { %v3171_v55 = vpop.f32.mrf.mxu3  ;;  %v3173_v30 = vpop.f32.mrf.mxu1 }
  0xa4   : > { %3926 = vst [vmem:[#allocation4_spill] sm:$0xff] %v3171_v55 }
  0xa6   : > { %v3179_v58 = vpop.f32.mrf.mxu0  ;;  %2516 = vmatmul.msk.bf16.gmra.mxu1 %vm352_vm1, %v3145_v41 }
  0xa7   : > { %2533 = vmatmul.msk.bf16.gmra.mxu2 %vm352_vm1, %v3175_v56 }
  0xa8   : > { %2582 = vmatmul.msk.bf16.gmra.mxu3 %vm352_vm1, %v3177_v57 }
  0xa9   : > { %2631 = vmatmul.msk.bf16.gmra.mxu0 %vm352_vm1, %v3024_v42 }
  0xaa   : > { %v3189_v59 = vpop.f32.mrf.mxu2 }
  0xab   : > { %v3191_v60 = vpop.f32.mrf.mxu3  ;;  %v3193_v61 = vpop.f32.mrf.mxu1 }
  0xac   : > { %3927 = vst [vmem:[#allocation5_spill] sm:$0xff] %v3191_v60 }
  0xae   : > { %v3195_v2 = vpop.f32.mrf.mxu0 }
  0xb2   : > { %v3201_v7 = vpop.f32.mrf.mxu2 }
  0xb3   : > { %v3203_v8 = vpop.f32.mrf.mxu3  ;;  %v3205_v42 = vpop.f32.mrf.mxu1 }
  0xb4   : > { %3928 = vst [vmem:[#allocation6_spill] sm:$0xff] %v3203_v8 }
  0xb6   : > { %v3211_v11 = vpop.f32.mrf.mxu0  ;;  %2517 = vmatmul.msk.bf16.gmra.mxu1 %vm352_vm1, %v3177_v57 }
  0xb7   : > { %2534 = vmatmul.msk.bf16.gmra.mxu2 %vm352_vm1, %v3207_v9 }
  0xb8   : > { %2583 = vmatmul.msk.bf16.gmra.mxu3 %vm352_vm1, %v3209_v10 }
  0xb9   : > { %2632 = vmatmul.msk.bf16.gmra.mxu0 %vm352_vm1, %v3064_v62 }
  0xba   : > { %v3221_v12 = vpop.f32.mrf.mxu2 }
  0xbb   : > { %v3223_v14 = vpop.f32.mrf.mxu3  ;;  %v3225_v15 = vpop.f32.mrf.mxu1 }
  0xbc   : > { %3930 = vst [vmem:[#allocation8_spill] sm:$0xff] %v3223_v14  ;;  %v653_v14 = vld [vmem:[%s2972_s7 + $0xe2] sm:$0xff] }
  0xbe   : > { %v3227_v20 = vpop.f32.mrf.mxu0 }
  0xc2   : > { %v3233_v27 = vpop.f32.mrf.mxu2 }
  0xc3   : > { %v3235_v28 = vpop.f32.mrf.mxu3  ;;  %v3237_v62 = vpop.f32.mrf.mxu1 }
  0xc4   : > { %3931 = vst [vmem:[#allocation9_spill] sm:$0xff] %v3235_v28 }
  0xc6   : > { %v3243_v36 = vpop.f32.mrf.mxu0  ;;  %2518 = vmatmul.msk.bf16.gmra.mxu1 %vm352_vm1, %v3209_v10 }
  0xc7   : > { %2535 = vmatmul.msk.bf16.gmra.mxu2 %vm352_vm1, %v3239_v29 }
  0xc8   : > { %2584 = vmatmul.msk.bf16.gmra.mxu3 %vm352_vm1, %v3241_v35 }
  0xc9   : > { %2633 = vmatmul.msk.bf16.gmra.mxu0 %vm352_vm1, %v2982_v17  ;;  %v3271_v17 = vpack.c.bf16 %v2561_v4, %v2560_v3 }
  0xca   : > { %v3253_v37 = vpop.f32.mrf.mxu2 }
  0xcb   : > { %v3255_v38 = vpop.f32.mrf.mxu3  ;;  %v3257_v50 = vpop.f32.mrf.mxu1 }
  0xcc   : > { %3934 = vst [vmem:[#allocation12_spill] sm:$0xff] %v3255_v38  ;;  %v652_v38 = vld [vmem:[%s2972_s7 + $0xda] sm:$0xff] }
  0xcd   : > { %v3289_v55 = vpack.c.bf16 %v653_v14, %v652_v38 }
  0xce   : > { %v3259_v51 = vpop.f32.mrf.mxu0 }
  0xd2   : > { %v3265_v5 = vpop.f32.mrf.mxu2 }
  0xd3   : > { %v3267_v6 = vpop.f32.mrf.mxu3  ;;  %v554_v21 = vpop.f32.mrf.mxu1 }
  0xd4   : > { %3935 = vst [vmem:[#allocation13_spill] sm:$0xff] %v3267_v6  ;;  %v555_v23 = vadd.f32 %v554_v21, %v3147_v46 }
  0xd6   : > { %v1189_v26 = vpop.f32.mrf.mxu0  ;;  %2519 = vmatmul.msk.bf16.gmra.mxu1 %vm352_vm1, %v3241_v35  ;;  %v2562_v35 = vld [vmem:[%s2972_s7 + $0xf0] sm:$0xff] }
  0xd7   : > { %2536 = vmatmul.msk.bf16.gmra.mxu2 %vm352_vm1, %v3269_v22  ;;  %v2563_v22 = vld [vmem:[%s2972_s7 + $0xf8] sm:$0xff] }
  0xd8   : > { %2585 = vmatmul.msk.bf16.gmra.mxu3 %vm352_vm1, %v3271_v17 }
  0xd9   : > { %2634 = vmatmul.msk.bf16.gmra.mxu0 %vm352_vm1, %v3005_v31  ;;  %v3291_v31 = vpack.c.bf16 %v2563_v22, %v2562_v35  ;;  %v654_v22 = vld [vmem:[%s2972_s7 + $0xf2] sm:$0xff] }
  0xda   : > { %v744_v52 = vpop.f32.mrf.mxu2 }
  0xdb   : > { %v967_v53 = vpop.f32.mrf.mxu3  ;;  %v824_v3 = vadd.f32 %v744_v52, %v555_v23  ;;  %v556_v4 = vpop.f32.mrf.mxu1 }
  0xdc   : > { %v557_v46 = vadd.f32 %v556_v4, %v3163_v49  ;;  %v2565_v4 = vld [vmem:[%s2972_s7 + $0x110] sm:$0xff] }
  0xdd   : > { %v1047_v21 = vadd.f32 %v967_v53, %v824_v3  ;;  %v655_v53 = vld [vmem:[%s2972_s7 + $0xfa] sm:$0xff]  ;;  %v2564_v3 = vld [vmem:[%s2972_s7 + $0x108] sm:$0xff] }
  0xde   : > { %v1191_v6 = vpop.f32.mrf.mxu0 }
  0xdf   : > { %v3284_v28 = vadd.f32 %v1189_v26, %v1047_v21 }
  0xe2   : > { %v746_v8 = vpop.f32.mrf.mxu2 }
  0xe3   : > { %v969_v60 = vpop.f32.mrf.mxu3  ;;  %v825_v29 = vadd.f32 %v746_v8, %v557_v46  ;;  %v559_v10 = vpop.f32.mrf.mxu1 }
  0xe4   : > { %v560_v23 = vadd.f32 %v559_v10, %v3179_v58 }
  0xe5   : > { %v1048_v49 = vadd.f32 %v969_v60, %v825_v29 }
  0xe6   : > { %v1194_v52 = vpop.f32.mrf.mxu0  ;;  %2520 = vmatmul.msk.bf16.gmra.mxu1 %vm352_vm1, %v3271_v17 }
  0xe7   : > { %2537 = vmatmul.msk.bf16.gmra.mxu2 %vm352_vm1, %v3289_v55  ;;  %v3300_v8 = vadd.f32 %v1191_v6, %v1048_v49 }
  0xe8   : > { %2586 = vmatmul.msk.bf16.gmra.mxu3 %vm352_vm1, %v3291_v31 }
  0xe9   : > { %3937 = vst [vmem:[#allocation15_spill] sm:$0xff] %v3300_v8  ;;  %2635 = vmatmul.msk.bf16.gmra.mxu0 %vm352_vm1, %v3026_v43  ;;  %v3311_v8 = vpack.c.bf16 %v655_v53, %v654_v22  ;;  %v3313_v43 = vpack.c.bf16 %v2565_v4, %v2564_v3  ;;  %v656_v53 = vld [vmem:[%s2972_s7 + $0x10a] sm:$0xff]  ;;  %v657_v4 = vld [vmem:[%s2972_s7 + $0x112] sm:$0xff] }
  0xea   : > { %v749_v58 = vpop.f32.mrf.mxu2 }
  0xeb   : > { %v972_v60 = vpop.f32.mrf.mxu3  ;;  %v826_v10 = vadd.f32 %v749_v58, %v560_v23  ;;  %v561_v14 = vpop.f32.mrf.mxu1 }
  0xec   : > { %v562_v29 = vadd.f32 %v561_v14, %v3195_v2 }
  0xed   : > { %v1049_v35 = vadd.f32 %v972_v60, %v826_v10 }
  0xee   : > { %v1196_v38 = vpop.f32.mrf.mxu0 }
  0xef   : > { %v3306_v26 = vadd.f32 %v1194_v52, %v1049_v35 }
  0xf2   : > { %v751_v46 = vpop.f32.mrf.mxu2 }
  0xf3   : > { %v974_v6 = vpop.f32.mrf.mxu3  ;;  %v827_v21 = vadd.f32 %v751_v46, %v562_v29  ;;  %v564_v49 = vpop.f32.mrf.mxu1  ;;  %v2566_v46 = vld [vmem:[%s2972_s7 + $0x120] sm:$0xff] }
  0xf4   : > { %v565_v23 = vadd.f32 %v564_v49, %v3211_v11 }
  0xf5   : > { %v1050_v2 = vadd.f32 %v974_v6, %v827_v21  ;;  %v2567_v6 = vld [vmem:[%s2972_s7 + $0x128] sm:$0xff] }
  0xf6   : > { %v1199_v58 = vpop.f32.mrf.mxu0  ;;  %2521 = vmatmul.msk.bf16.gmra.mxu1 %vm352_vm1, %v3291_v31 }
  0xf7   : > { %2538 = vmatmul.msk.bf16.gmra.mxu2 %vm352_vm1, %v3311_v8  ;;  %v3322_v52 = vadd.f32 %v1196_v38, %v1050_v2 }
  0xf8   : > { %2587 = vmatmul.msk.bf16.gmra.mxu3 %vm352_vm1, %v3313_v43 }
  0xf9   : > { %3938 = vst [vmem:[#allocation16_spill] sm:$0xff] %v3322_v52  ;;  %2636 = vmatmul.msk.bf16.gmra.mxu0 %vm352_vm1, %v3066_v63  ;;  %v3333_v52 = vpack.c.bf16 %v657_v4, %v656_v53  ;;  %v3335_v63 = vpack.c.bf16 %v2567_v6, %v2566_v46  ;;  %v658_v4 = vld [vmem:[%s2972_s7 + $0x122] sm:$0xff]  ;;  %v659_v6 = vld [vmem:[%s2972_s7 + $0x12a] sm:$0xff] }
  0xfa   : > { %v754_v11 = vpop.f32.mrf.mxu2 }
  0xfb   : > { %v977_v60 = vpop.f32.mrf.mxu3  ;;  %v828_v10 = vadd.f32 %v754_v11, %v565_v23  ;;  %v566_v14 = vpop.f32.mrf.mxu1 }
  0xfc   : > { %v567_v29 = vadd.f32 %v566_v14, %v3227_v20 }
  0xfd   : > { %v1051_v35 = vadd.f32 %v977_v60, %v828_v10 }
  0xfe   : > { %v1201_v22 = vpop.f32.mrf.mxu0 }
  0xff   : > { %v3328_v3 = vadd.f32 %v1199_v58, %v1051_v35 }
 0x102   : > { %v756_v21 = vpop.f32.mrf.mxu2 }
 0x103   : > { %v979_v38 = vpop.f32.mrf.mxu3  ;;  %v829_v49 = vadd.f32 %v756_v21, %v567_v29  ;;  %v569_v2 = vpop.f32.mrf.mxu1  ;;  %v2568_v21 = vld [vmem:[%s2972_s7 + $0x138] sm:$0xff] }
 0x104   : > { %v570_v23 = vadd.f32 %v569_v2, %v3243_v36 }
 0x105   : > { %v1052_v20 = vadd.f32 %v979_v38, %v829_v49  ;;  %v2569_v38 = vld [vmem:[%s2972_s7 + $0x140] sm:$0xff] }
 0x106   : > { %v1204_v11 = vpop.f32.mrf.mxu0  ;;  %2522 = vmatmul.msk.bf16.gmra.mxu1 %vm352_vm1, %v3313_v43 }
 0x107   : > { %2539 = vmatmul.msk.bf16.gmra.mxu2 %vm352_vm1, %v3333_v52  ;;  %v3344_v58 = vadd.f32 %v1201_v22, %v1052_v20 }
 0x108   : > { %2588 = vmatmul.msk.bf16.gmra.mxu3 %vm352_vm1, %v3335_v63 }
 0x109   : > { %3939 = vst [vmem:[#allocation17_spill] sm:$0xff] %v3344_v58  ;;  %2637 = vmatmul.msk.bf16.gmra.mxu0 %vm352_vm1, %v2984_v18  ;;  %v3355_v58 = vpack.c.bf16 %v659_v6, %v658_v4  ;;  %v3357_v18 = vpack.c.bf16 %v2569_v38, %v2568_v21  ;;  %v660_v6 = vld [vmem:[%s2972_s7 + $0x13a] sm:$0xff]  ;;  %v661_v38 = vld [vmem:[%s2972_s7 + $0x142] sm:$0xff] }
 0x10a   : > { %v759_v36 = vpop.f32.mrf.mxu2 }
 0x10b   : > { %v982_v60 = vpop.f32.mrf.mxu3  ;;  %v830_v10 = vadd.f32 %v759_v36, %v570_v23  ;;  %v571_v14 = vpop.f32.mrf.mxu1 }
 0x10c   : > { %v572_v29 = vadd.f32 %v571_v14, %v3259_v51 }
 0x10d   : > { %v1053_v35 = vadd.f32 %v982_v60, %v830_v10 }
 0x10e   : > { %v1206_v53 = vpop.f32.mrf.mxu0 }
 0x10f   : > { %v3350_v46 = vadd.f32 %v1204_v11, %v1053_v35 }
 0x111   : > { %3940 = vst [vmem:[#allocation18_spill] sm:$0xff] %v3350_v46  ;;  %v3377_v46 = vpack.c.bf16 %v661_v38, %v660_v6  ;;  %v662_v6 = vld [vmem:[%s2972_s7 + $0x152] sm:$0xff] }
 0x112   : > { %v761_v49 = vpop.f32.mrf.mxu2 }
 0x113   : > { %v984_v22 = vpop.f32.mrf.mxu3  ;;  %v831_v2 = vadd.f32 %v761_v49, %v572_v29  ;;  %v574_v20 = vpop.f32.mrf.mxu1  ;;  %v2570_v49 = vld [vmem:[%s2972_s7 + $0x150] sm:$0xff] }
 0x114   : > { %v575_v36 = vadd.f32 %v574_v20, %v3141_v39 }
 0x115   : > { %v1054_v23 = vadd.f32 %v984_v22, %v831_v2  ;;  %v2571_v22 = vld [vmem:[%s2972_s7 + $0x158] sm:$0xff] }
 0x116   : > { %v1209_v51 = vpop.f32.mrf.mxu0  ;;  %2523 = vmatmul.msk.bf16.gmra.mxu1 %vm352_vm1, %v3335_v63  ;;  %v3379_v39 = vpack.c.bf16 %v2571_v22, %v2570_v49  ;;  %v663_v49 = vld [vmem:[%s2972_s7 + $0x15a] sm:$0xff]  ;;  %v2572_v22 = vld [vmem:[%s2972_s7 + $0x168] sm:$0xff] }
 0x117   : > { %2540 = vmatmul.msk.bf16.gmra.mxu2 %vm352_vm1, %v3355_v58  ;;  %v3365_v11 = vadd.f32 %v1206_v53, %v1054_v23 }
 0x118   : > { %2589 = vmatmul.msk.bf16.gmra.mxu3 %vm352_vm1, %v3357_v18 }
 0x119   : > { %3941 = vst [vmem:[#allocation19_spill] sm:$0xff] %v3365_v11  ;;  %2638 = vmatmul.msk.bf16.gmra.mxu0 %vm352_vm1, %v3007_v32 }
 0x11a   : > { %v764_v60 = vpop.f32.mrf.mxu2 }
 0x11b   : > { %v987_v10 = vpop.f32.mrf.mxu3  ;;  %v832_v14 = vadd.f32 %v764_v60, %v575_v36  ;;  %v576_v29 = vpop.f32.mrf.mxu1 }
 0x11c   : > { %v577_v53 = vadd.f32 %v576_v29, %v3161_v48 }
 0x11d   : > { %v1055_v35 = vadd.f32 %v987_v10, %v832_v14 }
 0x11e   : > { %v1211_v4 = vpop.f32.mrf.mxu0 }
 0x11f   : > { %v3371_v21 = vadd.f32 %v1209_v51, %v1055_v35 }
 0x122   : > { %v766_v2 = vpop.f32.mrf.mxu2 }
 0x123   : > { %v989_v23 = vpop.f32.mrf.mxu3  ;;  %v833_v11 = vadd.f32 %v766_v2, %v577_v53  ;;  %v579_v32 = vpop.f32.mrf.mxu1  ;;  %v2573_v53 = vld [vmem:[%s2972_s7 + $0x170] sm:$0xff] }
 0x124   : > { %v580_v51 = vadd.f32 %v579_v32, %v3173_v30  ;;  %v3401_v30 = vpack.c.bf16 %v2573_v53, %v2572_v22  ;;  %v665_v53 = vld [vmem:[%s2972_s7 + $0x172] sm:$0xff] }
 0x125   : > { %v1056_v20 = vadd.f32 %v989_v23, %v833_v11 }
 0x126   : > { %v1214_v36 = vpop.f32.mrf.mxu0  ;;  %2524 = vmatmul.msk.bf16.gmra.mxu1 %vm352_vm1, %v3357_v18 }
 0x127   : > { %2541 = vmatmul.msk.bf16.gmra.mxu2 %vm352_vm1, %v3377_v46  ;;  %v3387_v48 = vadd.f32 %v1211_v4, %v1056_v20 }
 0x128   : > { %2590 = vmatmul.msk.bf16.gmra.mxu3 %vm352_vm1, %v3379_v39 }
 0x129   : > { %3942 = vst [vmem:[#allocation20_spill] sm:$0xff] %v3387_v48  ;;  %2639 = vmatmul.msk.bf16.gmra.mxu0 %vm352_vm1, %v3028_v44  ;;  %v3399_v48 = vpack.c.bf16 %v663_v49, %v662_v6  ;;  %v664_v49 = vld [vmem:[%s2972_s7 + $0x16a] sm:$0xff] }
 0x12a   : > { %v769_v11 = vpop.f32.mrf.mxu2 }
 0x12b   : > { %v992_v60 = vpop.f32.mrf.mxu3  ;;  %v834_v10 = vadd.f32 %v769_v11, %v580_v51  ;;  %v581_v14 = vpop.f32.mrf.mxu1 }
 0x12c   : > { %v582_v4 = vadd.f32 %v581_v14, %v3193_v61 }
 0x12d   : > { %v1057_v29 = vadd.f32 %v992_v60, %v834_v10 }
 0x12e   : > { %v1216_v35 = vpop.f32.mrf.mxu0 }
 0x12f   : > { %v3393_v38 = vadd.f32 %v1214_v36, %v1057_v29 }
 0x132   : > { %v771_v2 = vpop.f32.mrf.mxu2 }
 0x133   : > { %v994_v23 = vpop.f32.mrf.mxu3  ;;  %v835_v20 = vadd.f32 %v771_v2, %v582_v4  ;;  %v584_v44 = vpop.f32.mrf.mxu1  ;;  %v2574_v4 = vld [vmem:[%s2972_s7 + $0x180] sm:$0xff]  ;;  %v2575_v2 = vld [vmem:[%s2972_s7 + $0x188] sm:$0xff] }
 0x134   : > { %v585_v36 = vadd.f32 %v584_v44, %v3205_v42  ;;  %v3423_v44 = vpack.c.bf16 %v665_v53, %v664_v49 }
 0x135   : > { %v1058_v32 = vadd.f32 %v994_v23, %v835_v20  ;;  %v2623_v23 = vld [vmem:[%s2972_s7 + $0x181] sm:$0xff]  ;;  %v2624_v20 = vld [vmem:[%s2972_s7 + $0x189] sm:$0xff] }
 0x136   : > { %v1219_v51 = vpop.f32.mrf.mxu0  ;;  %2525 = vmatmul.msk.bf16.gmra.mxu1 %vm352_vm1, %v3379_v39 }
 0x137   : > { %2542 = vmatmul.msk.bf16.gmra.mxu2 %vm352_vm1, %v3399_v48  ;;  %v3409_v61 = vadd.f32 %v1216_v35, %v1058_v32 }
 0x138   : > { %2591 = vmatmul.msk.bf16.gmra.mxu3 %vm352_vm1, %v3401_v30 }
 0x139   : > { %3943 = vst [vmem:[#allocation21_spill] sm:$0xff] %v3409_v61  ;;  %2640 = vmatmul.msk.bf16.gmra.mxu0 %vm352_vm1, %v3068_v0 }
 0x13a   : > { %v774_v11 = vpop.f32.mrf.mxu2 }
 0x13b   : > { %v997_v60 = vpop.f32.mrf.mxu3  ;;  %v836_v10 = vadd.f32 %v774_v11, %v585_v36  ;;  %v586_v14 = vpop.f32.mrf.mxu1  ;;  %v3425_v36 = vpack.c.bf16 %v2575_v2, %v2574_v4  ;;  %v3427_v11 = vpack.c.bf16 %v2624_v20, %v2623_v23 }
 0x13c   : > { %v587_v35 = vadd.f32 %v586_v14, %v3225_v15 }
 0x13d   : > { %v1059_v29 = vadd.f32 %v997_v60, %v836_v10 }
 0x13e   : > { %v1221_v6 = vpop.f32.mrf.mxu0 }
 0x13f   : > { %v3415_v22 = vadd.f32 %v1219_v51, %v1059_v29 }
 0x142   : > { %v776_v32 = vpop.f32.mrf.mxu2 }
 0x143   : > { %v999_v0 = vpop.f32.mrf.mxu3  ;;  %v837_v61 = vadd.f32 %v776_v32, %v587_v35  ;;  %v589_v42 = vpop.f32.mrf.mxu1 }
 0x144   : > { %v590_v10 = vadd.f32 %v589_v42, %v3237_v62 }
 0x145   : > { %v1060_v60 = vadd.f32 %v999_v0, %v837_v61 }
 0x146   : > { %v1224_v51 = vpop.f32.mrf.mxu0  ;;  %2526 = vmatmul.msk.bf16.gmra.mxu1 %vm352_vm1, %v3401_v30 }
 0x147   : > { %2543 = vmatmul.msk.bf16.gmra.mxu2 %vm352_vm1, %v3423_v44  ;;  %v3435_v15 = vadd.f32 %v1221_v6, %v1060_v60 }
 0x148   : > { %2592 = vmatmul.msk.bf16.gmra.mxu3 %vm352_vm1, %v3425_v36 }
 0x149   : > { %2641 = vmatmul.msk.bf16.gmra.mxu0 %vm352_vm1, %v3427_v11 }
 0x14a   : > { %v779_v14 = vpop.f32.mrf.mxu2 }
 0x14b   : > { %v1002_v29 = vpop.f32.mrf.mxu3  ;;  %v838_v61 = vadd.f32 %v779_v14, %v590_v10  ;;  %v591_v49 = vpop.f32.mrf.mxu1 }
 0x14c   : > { %v592_v35 = vadd.f32 %v591_v49, %v3257_v50 }
 0x14d   : > { %v1061_v53 = vadd.f32 %v1002_v29, %v838_v61 }
 0x14e   : > { %v1226_v4 = vpop.f32.mrf.mxu0 }
 0x14f   : > { %v3440_v2 = vadd.f32 %v1224_v51, %v1061_v53 }
 0x152   : > { %v781_v23 = vpop.f32.mrf.mxu2 }
 0x153   : > { %v1004_v20 = vpop.f32.mrf.mxu3  ;;  %v839_v32 = vadd.f32 %v781_v23, %v592_v35  ;;  %v594_v6 = vpop.f32.mrf.mxu1 }
 0x154   : > { %v595_v50 = vadd.f32 %v594_v6, %v3157_v13 }
 0x155   : > { %v1062_v0 = vadd.f32 %v1004_v20, %v839_v32 }
 0x156   : > { %v1229_v60 = vpop.f32.mrf.mxu0  ;;  %2675 = vmatmul.msk.bf16.vlgmr.msra.gmra.mxu1 %vm352_vm1, %v3094_v16 }
 0x157   : > { %2724 = vmatmul.msk.bf16.vlgmr.msra.gmra.mxu2 %vm352_vm1, %v3096_v19  ;;  %v3449_v62 = vadd.f32 %v1226_v4, %v1062_v0 }
 0x158   : > { %2773 = vmatmul.msk.bf16.vlgmr.msra.gmra.mxu3 %vm352_vm1, %v3030_v45 }
 0x159   : > { %2822 = vmatmul.msk.bf16.vlgmr.msra.gmra.mxu0 %vm352_vm1, %v3109_v24 }
 0x15a   : > { %v784_v42 = vpop.f32.mrf.mxu2 }
 0x15b   : > { %v1007_v51 = vpop.f32.mrf.mxu3  ;;  %v840_v10 = vadd.f32 %v784_v42, %v595_v50  ;;  %v596_v14 = vpop.f32.mrf.mxu1  ;;  %v2744_v42 = vld [vmem:[%s2972_s7 + $0x61] sm:$0xff] }
 0x15c   : > { %v597_v19 = vadd.f32 %v596_v14, %v3169_v54 }
 0x15d   : > { %v1063_v29 = vadd.f32 %v1007_v51, %v840_v10 }
 0x15e   : > { %v1231_v61 = vpop.f32.mrf.mxu0 }
 0x15f   : > { %v3454_v16 = vadd.f32 %v1229_v60, %v1063_v29 }
 0x162   : > { %v786_v49 = vpop.f32.mrf.mxu2 }
 0x163   : > { %v1009_v53 = vpop.f32.mrf.mxu3  ;;  %v841_v45 = vadd.f32 %v786_v49, %v597_v19  ;;  %v599_v4 = vpop.f32.mrf.mxu1 }
 0x164   : > { %v600_v54 = vadd.f32 %v599_v4, %v3189_v59 }
 0x165   : > { %v1064_v35 = vadd.f32 %v1009_v53, %v841_v45 }
 0x166   : > { %v1234_v23 = vpop.f32.mrf.mxu0  ;;  %2676 = vmatmul.msk.bf16.gmra.mxu1 %vm352_vm1, %v3109_v24 }
 0x167   : > { %2725 = vmatmul.msk.bf16.gmra.mxu2 %vm352_vm1, %v3111_v25  ;;  %v3463_v13 = vadd.f32 %v1231_v61, %v1064_v35  ;;  %v2745_v25 = vld [vmem:[%s2972_s7 + $0x69] sm:$0xff] }
 0x168   : > { %2774 = vmatmul.msk.bf16.gmra.mxu3 %vm352_vm1, %v3070_v1  ;;  %v1780_v61 = vpack.c.bf16 %v2745_v25, %v2744_v42 }
 0x169   : > { %2823 = vmatmul.msk.bf16.gmra.mxu0 %vm352_vm1, %v3125_v33 }
 0x16a   : > { %v789_v20 = vpop.f32.mrf.mxu2 }
 0x16b   : > { %v1012_v32 = vpop.f32.mrf.mxu3  ;;  %v842_v6 = vadd.f32 %v789_v20, %v600_v54  ;;  %v601_v0 = vpop.f32.mrf.mxu1 }
 0x16c   : > { %v602_v51 = vadd.f32 %v601_v0, %v3201_v7 }
 0x16d   : > { %v1065_v60 = vadd.f32 %v1012_v32, %v842_v6  ;;  %v2747_v32 = vld [vmem:[%s2972_s7 + $0x81] sm:$0xff] }
 0x16e   : > { %v1236_v50 = vpop.f32.mrf.mxu0 }
 0x16f   : > { %v3468_v24 = vadd.f32 %v1234_v23, %v1065_v60 }
 0x172   : > { %v791_v1 = vpop.f32.mrf.mxu2 }
 0x173   : > { %v1014_v10 = vpop.f32.mrf.mxu3  ;;  %v843_v14 = vadd.f32 %v791_v1, %v602_v51  ;;  %v604_v29 = vpop.f32.mrf.mxu1 }
 0x174   : > { %v605_v7 = vadd.f32 %v604_v29, %v3221_v12 }
 0x175   : > { %v1066_v19 = vadd.f32 %v1014_v10, %v843_v14 }
 0x176   : > { %v1239_v59 = vpop.f32.mrf.mxu0  ;;  %2677 = vmatmul.msk.bf16.gmra.mxu1 %vm352_vm1, %v3125_v33  ;;  %v2746_v33 = vld [vmem:[%s2972_s7 + $0x79] sm:$0xff] }
 0x177   : > { %2726 = vmatmul.msk.bf16.gmra.mxu2 %vm352_vm1, %v3127_v34  ;;  %v3478_v49 = vadd.f32 %v1236_v50, %v1066_v19  ;;  %v1781_v42 = vpack.c.bf16 %v2747_v32, %v2746_v33 }
 0x178   : > { %2775 = vmatmul.msk.bf16.gmra.mxu3 %vm352_vm1, %v1780_v61 }
 0x179   : > { %2824 = vmatmul.msk.bf16.gmra.mxu0 %vm352_vm1, %v3143_v40 }
 0x17a   : > { %v794_v53 = vpop.f32.mrf.mxu2 }
 0x17b   : > { %v1017_v45 = vpop.f32.mrf.mxu3  ;;  %v844_v4 = vadd.f32 %v794_v53, %v605_v7  ;;  %v606_v35 = vpop.f32.mrf.mxu1  ;;  %v2749_v7 = vld [vmem:[%s2972_s7 + $0x99] sm:$0xff] }
 0x17c   : > { %v607_v34 = vadd.f32 %v606_v35, %v3233_v27 }
 0x17d   : > { %v1067_v23 = vadd.f32 %v1017_v45, %v844_v4 }
 0x17e   : > { %v1241_v54 = vpop.f32.mrf.mxu0 }
 0x17f   : > { %v3483_v20 = vadd.f32 %v1239_v59, %v1067_v23 }
 0x182   : > { %v796_v6 = vpop.f32.mrf.mxu2 }
 0x183   : > { %v1019_v0 = vpop.f32.mrf.mxu3  ;;  %v845_v60 = vadd.f32 %v796_v6, %v607_v34  ;;  %v609_v50 = vpop.f32.mrf.mxu1 }
 0x184   : > { %v610_v27 = vadd.f32 %v609_v50, %v3253_v37 }
 0x185   : > { %v1068_v25 = vadd.f32 %v1019_v0, %v845_v60 }
 0x186   : > { %v1244_v12 = vpop.f32.mrf.mxu0  ;;  %2678 = vmatmul.msk.bf16.gmra.mxu1 %vm352_vm1, %v3143_v40  ;;  %v2748_v40 = vld [vmem:[%s2972_s7 + $0x91] sm:$0xff] }
 0x187   : > { %2727 = vmatmul.msk.bf16.gmra.mxu2 %vm352_vm1, %v3145_v41  ;;  %v3493_v51 = vadd.f32 %v1241_v54, %v1068_v25  ;;  %v1782_v23 = vpack.c.bf16 %v2749_v7, %v2748_v40  ;;  %v2751_v25 = vld [vmem:[%s2972_s7 + $0xb1] sm:$0xff] }
 0x188   : > { %2776 = vmatmul.msk.bf16.gmra.mxu3 %vm352_vm1, %v1781_v42  ;;  %v3946_v7 = vld [vmem:[#allocation10_spill] sm:$0xff] }
 0x189   : > { %2825 = vmatmul.msk.bf16.gmra.mxu0 %vm352_vm1, %v3175_v56 }
 0x18a   : > { %v799_v1 = vpop.f32.mrf.mxu2 }
 0x18b   : > { %v1022_v10 = vpop.f32.mrf.mxu3  ;;  %v846_v14 = vadd.f32 %v799_v1, %v610_v27  ;;  %v611_v29 = vpop.f32.mrf.mxu1 }
 0x18c   : > { %v612_v41 = vadd.f32 %v611_v29, %v3265_v5 }
 0x18d   : > { %v1069_v61 = vadd.f32 %v1022_v10, %v846_v14 }
 0x18e   : > { %v1246_v19 = vpop.f32.mrf.mxu0 }
 0x18f   : > { %v3498_v59 = vadd.f32 %v1244_v12, %v1069_v61 }
 0x192   : > { %v801_v53 = vpop.f32.mrf.mxu2 }
 0x193   : > { %v1024_v45 = vpop.f32.mrf.mxu3  ;;  %v847_v4 = vadd.f32 %v801_v53, %v612_v41  ;;  %v614_v35 = vpop.f32.mrf.mxu1  ;;  %v3947_v41 = vld [vmem:[#allocation5_spill] sm:$0xff] }
 0x194   : > { %v615_v5 = vadd.f32 %v614_v35, %v3159_v47 }
 0x195   : > { %v1070_v54 = vadd.f32 %v1024_v45, %v847_v4 }
 0x196   : > { %v1249_v37 = vpop.f32.mrf.mxu0  ;;  %2679 = vmatmul.msk.bf16.gmra.mxu1 %vm352_vm1, %v3175_v56  ;;  %v2750_v56 = vld [vmem:[%s2972_s7 + $0xa9] sm:$0xff] }
 0x197   : > { %2728 = vmatmul.msk.bf16.gmra.mxu2 %vm352_vm1, %v3177_v57  ;;  %v3508_v33 = vadd.f32 %v1246_v19, %v1070_v54  ;;  %v3944_v57 = vld [vmem:[#allocation4_spill] sm:$0xff]  ;;  %v1783_v29 = vpack.c.bf16 %v2751_v25, %v2750_v56  ;;  %v3945_v19 = vld [vmem:[#allocation7_spill] sm:$0xff] }
 0x198   : > { %2777 = vmatmul.msk.bf16.gmra.mxu3 %vm352_vm1, %v1782_v23 }
 0x199   : > { %2826 = vmatmul.msk.bf16.gmra.mxu0 %vm352_vm1, %v3207_v9 }
 0x19a   : > { %v804_v32 = vpop.f32.mrf.mxu2 }
 0x19b   : > { %v1027_v34 = vpop.f32.mrf.mxu3  ;;  %v848_v6 = vadd.f32 %v804_v32, %v615_v5  ;;  %v616_v0 = vpop.f32.mrf.mxu1  ;;  %v2753_v32 = vld [vmem:[%s2972_s7 + $0xc9] sm:$0xff] }
 0x19c   : > { %v617_v12 = vadd.f32 %v616_v0, %v3944_v57 }
 0x19d   : > { %v1071_v60 = vadd.f32 %v1027_v34, %v848_v6  ;;  %v3948_v34 = vld [vmem:[#allocation6_spill] sm:$0xff] }
 0x19e   : > { %v1251_v50 = vpop.f32.mrf.mxu0 }
 0x19f   : > { %v3513_v42 = vadd.f32 %v1249_v37, %v1071_v60 }
 0x1a2   : > { %v806_v27 = vpop.f32.mrf.mxu2 }
 0x1a3   : > { %v1029_v1 = vpop.f32.mrf.mxu3  ;;  %v849_v10 = vadd.f32 %v806_v27, %v617_v12  ;;  %v619_v14 = vpop.f32.mrf.mxu1  ;;  %v3949_v27 = vld [vmem:[#allocation11_spill] sm:$0xff] }
 0x1a4   : > { %v620_v53 = vadd.f32 %v619_v14, %v3947_v41  ;;  %v3951_v14 = vld [vmem:[#allocation8_spill] sm:$0xff] }
 0x1a5   : > { %v1072_v61 = vadd.f32 %v1029_v1, %v849_v10  ;;  %v3950_v10 = vld [vmem:[#allocation14_spill] sm:$0xff] }
 0x1a6   : > { %v1254_v47 = vpop.f32.mrf.mxu0  ;;  %2680 = vmatmul.msk.bf16.gmra.mxu1 %vm352_vm1, %v3207_v9  ;;  %v2752_v9 = vld [vmem:[%s2972_s7 + $0xc1] sm:$0xff] }
 0x1a7   : > { %2729 = vmatmul.msk.bf16.gmra.mxu2 %vm352_vm1, %v3945_v19  ;;  %v3523_v40 = vadd.f32 %v1251_v50, %v1072_v61  ;;  %v1784_v25 = vpack.c.bf16 %v2753_v32, %v2752_v9 }
 0x1a8   : > { %2778 = vmatmul.msk.bf16.gmra.mxu3 %vm352_vm1, %v1783_v29 }
 0x1a9   : > { %2827 = vmatmul.msk.bf16.gmra.mxu0 %vm352_vm1, %v3946_v7 }
 0x1aa   : > { %v809_v45 = vpop.f32.mrf.mxu2 }
 0x1ab   : > { %v1032_v4 = vpop.f32.mrf.mxu3  ;;  %v850_v35 = vadd.f32 %v809_v45, %v620_v53  ;;  %v621_v23 = vpop.f32.mrf.mxu1 }
 0x1ac   : > { %v622_v6 = vadd.f32 %v621_v23, %v3948_v34  ;;  %v3952_v23 = vld [vmem:[#allocation9_spill] sm:$0xff] }
 0x1ad   : > { %v1073_v54 = vadd.f32 %v1032_v4, %v850_v35  ;;  %v2755_v35 = vld [vmem:[%s2972_s7 + $0xe1] sm:$0xff] }
 0x1ae   : > { %v1256_v37 = vpop.f32.mrf.mxu0 }
 0x1af   : > { %v3528_v5 = vadd.f32 %v1254_v47, %v1073_v54 }
 0x1b2   : > { %v811_v0 = vpop.f32.mrf.mxu2 }
 0x1b3   : > { %v1034_v60 = vpop.f32.mrf.mxu3  ;;  %v851_v50 = vadd.f32 %v811_v0, %v622_v6  ;;  %v624_v56 = vpop.f32.mrf.mxu1 }
 0x1b4   : > { %v625_v29 = vadd.f32 %v624_v56, %v3951_v14  ;;  %v3953_v56 = vld [vmem:[#allocation12_spill] sm:$0xff] }
 0x1b5   : > { %v1074_v57 = vadd.f32 %v1034_v60, %v851_v50 }
 0x1b6   : > { %v1259_v12 = vpop.f32.mrf.mxu0  ;;  %2681 = vmatmul.msk.bf16.gmra.mxu1 %vm352_vm1, %v3946_v7  ;;  %v2754_v7 = vld [vmem:[%s2972_s7 + $0xd9] sm:$0xff] }
 0x1b7   : > { %2730 = vmatmul.msk.bf16.gmra.mxu2 %vm352_vm1, %v3949_v27  ;;  %v3538_v1 = vadd.f32 %v1256_v37, %v1074_v57  ;;  %v1785_v6 = vpack.c.bf16 %v2755_v35, %v2754_v7 }
 0x1b8   : > { %2779 = vmatmul.msk.bf16.gmra.mxu3 %vm352_vm1, %v1784_v25 }
 0x1b9   : > { %2828 = vmatmul.msk.bf16.gmra.mxu0 %vm352_vm1, %v3950_v10 }
 0x1ba   : > { %v814_v61 = vpop.f32.mrf.mxu2 }
 0x1bb   : > { %v1037_v47 = vpop.f32.mrf.mxu3  ;;  %v852_v19 = vadd.f32 %v814_v61, %v625_v29  ;;  %v626_v41 = vpop.f32.mrf.mxu1 }
 0x1bc   : > { %v627_v54 = vadd.f32 %v626_v41, %v3952_v23 }
 0x1bd   : > { %v1075_v53 = vadd.f32 %v1037_v47, %v852_v19  ;;  %v2757_v19 = vld [vmem:[%s2972_s7 + $0xf9] sm:$0xff] }
 0x1be   : > { %v1261_v45 = vpop.f32.mrf.mxu0 }
 0x1bf   : > { %v3543_v4 = vadd.f32 %v1259_v12, %v1075_v53 }
 0x1c2   : > { %v816_v9 = vpop.f32.mrf.mxu2 }
 0x1c3   : > { %v1039_v37 = vpop.f32.mrf.mxu3  ;;  %v853_v32 = vadd.f32 %v816_v9, %v627_v54  ;;  %v629_v34 = vpop.f32.mrf.mxu1 }
 0x1c4   : > { %v630_v25 = vadd.f32 %v629_v34, %v3953_v56 }
 0x1c5   : > { %v1076_v0 = vadd.f32 %v1039_v37, %v853_v32 }
 0x1c6   : > { %v1264_v60 = vpop.f32.mrf.mxu0  ;;  %2682 = vmatmul.msk.bf16.gmra.mxu1 %vm352_vm1, %v3950_v10  ;;  %v2756_v10 = vld [vmem:[%s2972_s7 + $0xf1] sm:$0xff] }
 0x1c7   : > { %2731 = vmatmul.msk.bf16.gmra.mxu2 %vm352_vm1, %v3271_v17  ;;  %v3553_v50 = vadd.f32 %v1261_v45, %v1076_v0  ;;  %v3954_v17 = vld [vmem:[#allocation13_spill] sm:$0xff]  ;;  %v1786_v23 = vpack.c.bf16 %v2757_v19, %v2756_v10 }
 0x1c8   : > { %2780 = vmatmul.msk.bf16.gmra.mxu3 %vm352_vm1, %v1785_v6 }
 0x1c9   : > { %2829 = vmatmul.msk.bf16.gmra.mxu0 %vm352_vm1, %v3289_v55 }
 0x1ca   : > { %v819_v57 = vpop.f32.mrf.mxu2 }
 0x1cb   : > { %v1042_v12 = vpop.f32.mrf.mxu3  ;;  %v854_v27 = vadd.f32 %v819_v57, %v630_v25  ;;  %v631_v14 = vpop.f32.mrf.mxu1  ;;  %v2758_v25 = vld [vmem:[%s2972_s7 + $0x109] sm:$0xff]  ;;  %v2759_v57 = vld [vmem:[%s2972_s7 + $0x111] sm:$0xff] }
 0x1cc   : > { %v632_v41 = vadd.f32 %v631_v14, %v3954_v17  ;;  %v1787_v10 = vpack.c.bf16 %v2759_v57, %v2758_v25 }
 0x1cd   : > { %v1077_v29 = vadd.f32 %v1042_v12, %v854_v27 }
 0x1ce   : > { %v1266_v61 = vpop.f32.mrf.mxu0 }
 0x1cf   : > { %v3558_v47 = vadd.f32 %v1264_v60, %v1077_v29 }
 0x1d2   : > { %v821_v53 = vpop.f32.mrf.mxu2 }
 0x1d3   : > { %v1044_v45 = vpop.f32.mrf.mxu3  ;;  %v855_v7 = vadd.f32 %v821_v53, %v632_v41  ;;  %v1411_v35 = vpop.f32.mrf.mxu1 }
 0x1d4   : > { %v1491_v32 = vadd.f32 %v1411_v35, %v3284_v28  ;;  %v3955_v28 = vld [vmem:[#allocation15_spill] sm:$0xff] }
 0x1d5   : > { %v1078_v54 = vadd.f32 %v1044_v45, %v855_v7 }
 0x1d6   : > { %v2078_v9 = vpop.f32.mrf.mxu0  ;;  %2683 = vmatmul.msk.bf16.gmra.mxu1 %vm352_vm1, %v3289_v55 }
 0x1d7   : > { %2732 = vmatmul.msk.bf16.gmra.mxu2 %vm352_vm1, %v3291_v31  ;;  %v3568_v37 = vadd.f32 %v1266_v61, %v1078_v54 }
 0x1d8   : > { %2781 = vmatmul.msk.bf16.gmra.mxu3 %vm352_vm1, %v1786_v23 }
 0x1d9   : > { %2830 = vmatmul.msk.bf16.gmra.mxu0 %vm352_vm1, %v3311_v8 }
 0x1da   : > { %v1634_v34 = vpop.f32.mrf.mxu2 }
 0x1db   : > { %v1856_v6 = vpop.f32.mrf.mxu3  ;;  %v1714_v0 = vadd.f32 %v1634_v34, %v1491_v32  ;;  %v1413_v60 = vpop.f32.mrf.mxu1  ;;  %v2760_v32 = vld [vmem:[%s2972_s7 + $0x121] sm:$0xff] }
 0x1dc   : > { %v1492_v12 = vadd.f32 %v1413_v60, %v3955_v28  ;;  %v3956_v34 = vld [vmem:[#allocation16_spill] sm:$0xff] }
 0x1dd   : > { %v1936_v56 = vadd.f32 %v1856_v6, %v1714_v0 }
 0x1de   : > { %v2080_v55 = vpop.f32.mrf.mxu0 }
 0x1df   : > { %v3579_v31 = vadd.f32 %v2078_v9, %v1936_v56 }
 0x1e1   : > { %2190 = vst [vmem:[%s3577_s23] sm:$0xff] %v3579_v31 }
 0x1e2   : > { %v1636_v27 = vpop.f32.mrf.mxu2 }
 0x1e3   : > { %v1858_v14 = vpop.f32.mrf.mxu3  ;;  %v1715_v29 = vadd.f32 %v1636_v27, %v1492_v12  ;;  %v1416_v61 = vpop.f32.mrf.mxu1 }
 0x1e4   : > { %v1493_v53 = vadd.f32 %v1416_v61, %v3306_v26 }
 0x1e5   : > { %v1937_v19 = vadd.f32 %v1858_v14, %v1715_v29 }
 0x1e6   : > { %v2083_v17 = vpop.f32.mrf.mxu0  ;;  %2684 = vmatmul.msk.bf16.gmra.mxu1 %vm352_vm1, %v3311_v8 }
 0x1e7   : > { %v3588_v41 = vadd.f32 %v2080_v55, %v1937_v19  ;;  %2733 = vmatmul.msk.bf16.gmra.mxu2 %vm352_vm1, %v3313_v43  ;;  %v2761_v43 = vld [vmem:[%s2972_s7 + $0x129] sm:$0xff] }
 0x1e8   : > { %2782 = vmatmul.msk.bf16.gmra.mxu3 %vm352_vm1, %v1787_v10  ;;  %v1788_v26 = vpack.c.bf16 %v2761_v43, %v2760_v32 }
 0x1e9   : > { %2831 = vmatmul.msk.bf16.gmra.mxu0 %vm352_vm1, %v3333_v52  ;;  %2191 = vst [vmem:[%s3577_s23 + $0x8] sm:$0xff] %v3588_v41 }
 0x1ea   : > { %v1639_v45 = vpop.f32.mrf.mxu2 }
 0x1eb   : > { %v1861_v7 = vpop.f32.mrf.mxu3  ;;  %v1716_v35 = vadd.f32 %v1639_v45, %v1493_v53  ;;  %v1418_v23 = vpop.f32.mrf.mxu1  ;;  %v3957_v53 = vld [vmem:[#allocation17_spill] sm:$0xff] }
 0x1ec   : > { %v1494_v6 = vadd.f32 %v1418_v23, %v3956_v34  ;;  %v3958_v34 = vld [vmem:[#allocation18_spill] sm:$0xff] }
 0x1ed   : > { %v1938_v8 = vadd.f32 %v1861_v7, %v1716_v35 }
 0x1ee   : > { %v2085_v54 = vpop.f32.mrf.mxu0 }
 0x1ef   : > { %v3598_v9 = vadd.f32 %v2083_v17, %v1938_v8  ;;  %v2762_v17 = vld [vmem:[%s2972_s7 + $0x139] sm:$0xff] }
 0x1f1   : > { %2192 = vst [vmem:[%s3577_s23 + $0x10] sm:$0xff] %v3598_v9 }
 0x1f2   : > { %v1641_v0 = vpop.f32.mrf.mxu2 }
 0x1f3   : > { %v1863_v60 = vpop.f32.mrf.mxu3  ;;  %v1717_v56 = vadd.f32 %v1641_v0, %v1494_v6  ;;  %v1421_v55 = vpop.f32.mrf.mxu1 }
 0x1f4   : > { %v1495_v12 = vadd.f32 %v1421_v55, %v3328_v3 }
 0x1f5   : > { %v1939_v25 = vadd.f32 %v1863_v60, %v1717_v56 }
 0x1f6   : > { %v2088_v57 = vpop.f32.mrf.mxu0  ;;  %2685 = vmatmul.msk.bf16.gmra.mxu1 %vm352_vm1, %v3333_v52 }
 0x1f7   : > { %v3607_v28 = vadd.f32 %v2085_v54, %v1939_v25  ;;  %2734 = vmatmul.msk.bf16.gmra.mxu2 %vm352_vm1, %v3335_v63  ;;  %v2763_v63 = vld [vmem:[%s2972_s7 + $0x141] sm:$0xff] }
 0x1f8   : > { %2783 = vmatmul.msk.bf16.gmra.mxu3 %vm352_vm1, %v1788_v26  ;;  %v1789_v3 = vpack.c.bf16 %v2763_v63, %v2762_v17 }
 0x1f9   : > { %2832 = vmatmul.msk.bf16.gmra.mxu0 %vm352_vm1, %v3355_v58  ;;  %2193 = vst [vmem:[%s3577_s23 + $0x18] sm:$0xff] %v3607_v28 }
 0x1fa   : > { %v1644_v27 = vpop.f32.mrf.mxu2 }
 0x1fb   : > { %v1866_v14 = vpop.f32.mrf.mxu3  ;;  %v1718_v29 = vadd.f32 %v1644_v27, %v1495_v12  ;;  %v1423_v61 = vpop.f32.mrf.mxu1  ;;  %v3959_v12 = vld [vmem:[#allocation19_spill] sm:$0xff] }
 0x1fc   : > { %v1496_v45 = vadd.f32 %v1423_v61, %v3957_v53 }
 0x1fd   : > { %v1940_v52 = vadd.f32 %v1866_v14, %v1718_v29 }
 0x1fe   : > { %v2090_v10 = vpop.f32.mrf.mxu0 }
 0x1ff   : > { %v3617_v19 = vadd.f32 %v2088_v57, %v1940_v52  ;;  %v2764_v57 = vld [vmem:[%s2972_s7 + $0x151] sm:$0xff] }
 0x201   : > { %2194 = vst [vmem:[%s3577_s23 + $0x20] sm:$0xff] %v3617_v19 }
 0x202   : > { %v1646_v7 = vpop.f32.mrf.mxu2 }
 0x203   : > { %v1868_v35 = vpop.f32.mrf.mxu3  ;;  %v1719_v23 = vadd.f32 %v1646_v7, %v1496_v45  ;;  %v1426_v8 = vpop.f32.mrf.mxu1 }
 0x204   : > { %v1497_v6 = vadd.f32 %v1426_v8, %v3958_v34  ;;  %v3960_v34 = vld [vmem:[#allocation20_spill] sm:$0xff] }
 0x205   : > { %v1941_v54 = vadd.f32 %v1868_v35, %v1719_v23 }
 0x206   : > { %v2093_v32 = vpop.f32.mrf.mxu0  ;;  %2686 = vmatmul.msk.bf16.gmra.mxu1 %vm352_vm1, %v3355_v58 }
 0x207   : > { %v3626_v43 = vadd.f32 %v2090_v10, %v1941_v54  ;;  %2735 = vmatmul.msk.bf16.gmra.mxu2 %vm352_vm1, %v3357_v18  ;;  %v2765_v18 = vld [vmem:[%s2972_s7 + $0x159] sm:$0xff] }
 0x208   : > { %2784 = vmatmul.msk.bf16.gmra.mxu3 %vm352_vm1, %v1789_v3  ;;  %v1790_v10 = vpack.c.bf16 %v2765_v18, %v2764_v57 }
 0x209   : > { %2833 = vmatmul.msk.bf16.gmra.mxu0 %vm352_vm1, %v3377_v46  ;;  %2195 = vst [vmem:[%s3577_s23 + $0x28] sm:$0xff] %v3626_v43 }
 0x20a   : > { %v1649_v0 = vpop.f32.mrf.mxu2 }
 0x20b   : > { %v1871_v60 = vpop.f32.mrf.mxu3  ;;  %v1720_v56 = vadd.f32 %v1649_v0, %v1497_v6  ;;  %v1428_v55 = vpop.f32.mrf.mxu1 }
 0x20c   : > { %v1498_v27 = vadd.f32 %v1428_v55, %v3959_v12 }
 0x20d   : > { %v1942_v58 = vadd.f32 %v1871_v60, %v1720_v56 }
 0x20e   : > { %v2095_v26 = vpop.f32.mrf.mxu0 }
 0x20f   : > { %v3636_v25 = vadd.f32 %v2093_v32, %v1942_v58  ;;  %v2766_v32 = vld [vmem:[%s2972_s7 + $0x169] sm:$0xff] }
 0x211   : > { %2196 = vst [vmem:[%s3577_s23 + $0x30] sm:$0xff] %v3636_v25 }
 0x212   : > { %v1651_v14 = vpop.f32.mrf.mxu2 }
 0x213   : > { %v1873_v29 = vpop.f32.mrf.mxu3  ;;  %v1721_v61 = vadd.f32 %v1651_v14, %v1498_v27  ;;  %v1431_v52 = vpop.f32.mrf.mxu1 }
 0x214   : > { %v1499_v45 = vadd.f32 %v1431_v52, %v3371_v21 }
 0x215   : > { %v1943_v17 = vadd.f32 %v1873_v29, %v1721_v61 }
 0x216   : > { %v2098_v63 = vpop.f32.mrf.mxu0  ;;  %2687 = vmatmul.msk.bf16.gmra.mxu1 %vm352_vm1, %v3377_v46 }
 0x217   : > { %v3645_v53 = vadd.f32 %v2095_v26, %v1943_v17  ;;  %2736 = vmatmul.msk.bf16.gmra.mxu2 %vm352_vm1, %v3379_v39  ;;  %v2767_v39 = vld [vmem:[%s2972_s7 + $0x171] sm:$0xff]  ;;  %v2817_v17 = vld [vmem:[%s2972_s7 + $0x182] sm:$0xff] }
 0x218   : > { %2785 = vmatmul.msk.bf16.gmra.mxu3 %vm352_vm1, %v1790_v10  ;;  %v1791_v21 = vpack.c.bf16 %v2767_v39, %v2766_v32 }
 0x219   : > { %2834 = vmatmul.msk.bf16.gmra.mxu0 %vm352_vm1, %v3399_v48  ;;  %2197 = vst [vmem:[%s3577_s23 + $0x38] sm:$0xff] %v3645_v53 }
 0x21a   : > { %v1654_v7 = vpop.f32.mrf.mxu2 }
 0x21b   : > { %v1876_v35 = vpop.f32.mrf.mxu3  ;;  %v1722_v23 = vadd.f32 %v1654_v7, %v1499_v45  ;;  %v1433_v8 = vpop.f32.mrf.mxu1 }
 0x21c   : > { %v1500_v6 = vadd.f32 %v1433_v8, %v3960_v34 }
 0x21d   : > { %v1944_v46 = vadd.f32 %v1876_v35, %v1722_v23 }
 0x21e   : > { %v2100_v3 = vpop.f32.mrf.mxu0 }
 0x21f   : > { %v3655_v54 = vadd.f32 %v2098_v63, %v1944_v46  ;;  %v2818_v63 = vld [vmem:[%s2972_s7 + $0x18a] sm:$0xff] }
 0x221   : > { %2198 = vst [vmem:[%s3577_s23 + $0x40] sm:$0xff] %v3655_v54 }
 0x222   : > { %v1656_v0 = vpop.f32.mrf.mxu2 }
 0x223   : > { %v1878_v60 = vpop.f32.mrf.mxu3  ;;  %v1723_v56 = vadd.f32 %v1656_v0, %v1500_v6  ;;  %v1436_v55 = vpop.f32.mrf.mxu1 }
 0x224   : > { %v1501_v18 = vadd.f32 %v1436_v55, %v3393_v38  ;;  %v2014_v38 = vpack.c.bf16 %v2818_v63, %v2817_v17  ;;  %v2722_v55 = vld [vmem:[%s2972_s7 + $0x1a0] sm:$0xff] }
 0x225   : > { %v1945_v58 = vadd.f32 %v1878_v60, %v1723_v56 }
 0x226   : > { %v2103_v26 = vpop.f32.mrf.mxu0  ;;  %2688 = vmatmul.msk.bf16.gmra.mxu1 %vm352_vm1, %v3399_v48 }
 0x227   : > { %v3664_v57 = vadd.f32 %v2100_v3, %v1945_v58  ;;  %2737 = vmatmul.msk.bf16.gmra.mxu2 %vm352_vm1, %v3401_v30  ;;  %v3961_v30 = vld [vmem:[#allocation21_spill] sm:$0xff] }
 0x228   : > { %2786 = vmatmul.msk.bf16.gmra.mxu3 %vm352_vm1, %v1791_v21  ;;  %v2770_v21 = vld [vmem:[%s2972_s7 + $0x199] sm:$0xff] }
 0x229   : > { %2835 = vmatmul.msk.bf16.gmra.mxu0 %vm352_vm1, %v3423_v44  ;;  %2199 = vst [vmem:[%s3577_s23 + $0x48] sm:$0xff] %v3664_v57 }
 0x22a   : > { %v1659_v12 = vpop.f32.mrf.mxu2 }
 0x22b   : > { %v1881_v27 = vpop.f32.mrf.mxu3  ;;  %v1724_v14 = vadd.f32 %v1659_v12, %v1501_v18  ;;  %v1438_v48 = vpop.f32.mrf.mxu1  ;;  %v2820_v18 = vld [vmem:[%s2972_s7 + $0x1a2] sm:$0xff] }
 0x22c   : > { %v1502_v10 = vadd.f32 %v1438_v48, %v3961_v30 }
 0x22d   : > { %v1946_v29 = vadd.f32 %v1881_v27, %v1724_v14 }
 0x22e   : > { %v2105_v61 = vpop.f32.mrf.mxu0 }
 0x22f   : > { %v3674_v52 = vadd.f32 %v2103_v26, %v1946_v29  ;;  %v2819_v26 = vld [vmem:[%s2972_s7 + $0x19a] sm:$0xff] }
 0x231   : > { %2200 = vst [vmem:[%s3577_s23 + $0x50] sm:$0xff] %v3674_v52 }
 0x232   : > { %v1661_v45 = vpop.f32.mrf.mxu2 }
 0x233   : > { %v1883_v7 = vpop.f32.mrf.mxu3  ;;  %v1725_v35 = vadd.f32 %v1661_v45, %v1502_v10  ;;  %v1441_v23 = vpop.f32.mrf.mxu1 }
 0x234   : > { %v1503_v32 = vadd.f32 %v1441_v23, %v3415_v22 }
 0x235   : > { %v1947_v8 = vadd.f32 %v1883_v7, %v1725_v35 }
 0x236   : > { %v2108_v46 = vpop.f32.mrf.mxu0  ;;  %2689 = vmatmul.msk.bf16.gmra.mxu1 %vm352_vm1, %v3423_v44 }
 0x237   : > { %v3683_v3 = vadd.f32 %v2105_v61, %v1947_v8  ;;  %2738 = vmatmul.msk.bf16.gmra.mxu2 %vm352_vm1, %v3425_v36  ;;  %v2721_v36 = vld [vmem:[%s2972_s7 + $0x198] sm:$0xff]  ;;  %v2015_v61 = vpack.c.bf16 %v2820_v18, %v2819_v26 }
 0x238   : > { %2787 = vmatmul.msk.bf16.gmra.mxu3 %vm352_vm1, %v3427_v11  ;;  %v2771_v11 = vld [vmem:[%s2972_s7 + $0x1a1] sm:$0xff]  ;;  %v1571_v48 = vpack.c.bf16 %v2722_v55, %v2721_v36 }
 0x239   : > { %2836 = vmatmul.msk.bf16.gmra.mxu0 %vm352_vm1, %v2014_v38  ;;  %2201 = vst [vmem:[%s3577_s23 + $0x58] sm:$0xff] %v3683_v3  ;;  %v1793_v29 = vpack.c.bf16 %v2771_v11, %v2770_v21 }
 0x23a   : > { %v1664_v44 = vpop.f32.mrf.mxu2 }
 0x23b   : > { %v1886_v39 = vpop.f32.mrf.mxu3  ;;  %v1726_v34 = vadd.f32 %v1664_v44, %v1503_v32  ;;  %v1443_v6 = vpop.f32.mrf.mxu1 }
 0x23c   : > { %v1504_v58 = vadd.f32 %v1443_v6, %v3435_v15 }
 0x23d   : > { %v1948_v0 = vadd.f32 %v1886_v39, %v1726_v34 }
 0x23e   : > { %v2110_v60 = vpop.f32.mrf.mxu0 }
 0x23f   : > { %v3693_v56 = vadd.f32 %v2108_v46, %v1948_v0 }
 0x241   : > { %2202 = vst [vmem:[%s3577_s23 + $0x60] sm:$0xff] %v3693_v56 }
 0x242   : > { %v1666_v22 = vpop.f32.mrf.mxu2 }
 0x243   : > { %v1888_v12 = vpop.f32.mrf.mxu3  ;;  %v1727_v27 = vadd.f32 %v1666_v22, %v1504_v58  ;;  %v1446_v14 = vpop.f32.mrf.mxu1 }
 0x244   : > { %v1505_v15 = vadd.f32 %v1446_v14, %v3440_v2 }
 0x245   : > { %v1949_v30 = vadd.f32 %v1888_v12, %v1727_v27 }
 0x246   : > { %v2113_v10 = vpop.f32.mrf.mxu0  ;;  %2690 = vmatmul.msk.bf16.gmra.mxu1 %vm352_vm1, %v2014_v38 }
 0x247   : > { %v3705_v17 = vadd.f32 %v2110_v60, %v1949_v30  ;;  %2739 = vmatmul.msk.bf16.gmra.mxu2 %vm352_vm1, %v1571_v48 }
 0x248   : > { %2788 = vmatmul.msk.bf16.gmra.mxu3 %vm352_vm1, %v1793_v29 }
 0x249   : > { %2837 = vmatmul.msk.bf16.gmra.mxu0 %vm352_vm1, %v2015_v61  ;;  %2203 = vst [vmem:[%s3577_s23 + $0x68] sm:$0xff] %v3705_v17 }
 0x24a   : > { %v1669_v63 = vpop.f32.mrf.mxu2 }
 0x24b   : > { %v1891_v45 = vpop.f32.mrf.mxu3  ;;  %v1728_v7 = vadd.f32 %v1669_v63, %v1505_v15  ;;  %v1448_v35 = vpop.f32.mrf.mxu1 }
 0x24c   : > { %v1506_v46 = vadd.f32 %v1448_v35, %v3449_v62 }
 0x24d   : > { %v1950_v23 = vadd.f32 %v1891_v45, %v1728_v7 }
 0x24e   : > { %v2115_v8 = vpop.f32.mrf.mxu0 }
 0x24f   : > { %v3713_v38 = vadd.f32 %v2113_v10, %v1950_v23 }
 0x251   : > { %2204 = vst [vmem:[%s3577_s23 + $0x70] sm:$0xff] %v3713_v38 }
 0x252   : > { %v1671_v32 = vpop.f32.mrf.mxu2 }
 0x253   : > { %v1893_v44 = vpop.f32.mrf.mxu3  ;;  %v1729_v39 = vadd.f32 %v1671_v32, %v1506_v46  ;;  %v1451_v34 = vpop.f32.mrf.mxu1 }
 0x254   : > { %v1507_v60 = vadd.f32 %v1451_v34, %v3454_v16 }
 0x255   : > { %v1951_v6 = vadd.f32 %v1893_v44, %v1729_v39 }
 0x256   : > { %v2118_v2 = vpop.f32.mrf.mxu0 }
 0x257   : > { %v3718_v0 = vadd.f32 %v2115_v8, %v1951_v6 }
 0x259   : > { %2205 = vst [vmem:[%s3577_s23 + $0x78] sm:$0xff] %v3718_v0 }
 0x25a   : > { %v1674_v36 = vpop.f32.mrf.mxu2 }
 0x25b   : > { %v1896_v55 = vpop.f32.mrf.mxu3  ;;  %v1730_v21 = vadd.f32 %v1674_v36, %v1507_v60  ;;  %v1453_v11 = vpop.f32.mrf.mxu1 }
 0x25c   : > { %v1508_v18 = vadd.f32 %v1453_v11, %v3463_v13 }
 0x25d   : > { %v1952_v58 = vadd.f32 %v1896_v55, %v1730_v21 }
 0x25e   : > { %v2120_v62 = vpop.f32.mrf.mxu0 }
 0x25f   : > { %v3723_v26 = vadd.f32 %v2118_v2, %v1952_v58 }
 0x261   : > { %2206 = vst [vmem:[%s3577_s23 + $0x80] sm:$0xff] %v3723_v26 }
 0x262   : > { %v1676_v22 = vpop.f32.mrf.mxu2 }
 0x263   : > { %v1898_v12 = vpop.f32.mrf.mxu3  ;;  %v1731_v27 = vadd.f32 %v1676_v22, %v1508_v18  ;;  %v1456_v14 = vpop.f32.mrf.mxu1 }
 0x264   : > { %v1509_v61 = vadd.f32 %v1456_v14, %v3468_v24 }
 0x265   : > { %v1953_v48 = vadd.f32 %v1898_v12, %v1731_v27 }
 0x266   : > { %v2123_v16 = vpop.f32.mrf.mxu0 }
 0x267   : > { %v3728_v29 = vadd.f32 %v2120_v62, %v1953_v48 }
 0x269   : > { %2207 = vst [vmem:[%s3577_s23 + $0x88] sm:$0xff] %v3728_v29 }
 0x26a   : > { %v1679_v30 = vpop.f32.mrf.mxu2 }
 0x26b   : > { %v1901_v10 = vpop.f32.mrf.mxu3  ;;  %v1732_v15 = vadd.f32 %v1679_v30, %v1509_v61  ;;  %v1458_v63 = vpop.f32.mrf.mxu1 }
 0x26c   : > { %v1510_v35 = vadd.f32 %v1458_v63, %v3478_v49 }
 0x26d   : > { %v1954_v45 = vadd.f32 %v1901_v10, %v1732_v15 }
 0x26e   : > { %v2125_v13 = vpop.f32.mrf.mxu0 }
 0x26f   : > { %v3733_v7 = vadd.f32 %v2123_v16, %v1954_v45 }
 0x271   : > { %2208 = vst [vmem:[%s3577_s23 + $0x90] sm:$0xff] %v3733_v7 }
 0x272   : > { %v1681_v23 = vpop.f32.mrf.mxu2 }
 0x273   : > { %v1903_v8 = vpop.f32.mrf.mxu3  ;;  %v1733_v46 = vadd.f32 %v1681_v23, %v1510_v35  ;;  %v1461_v32 = vpop.f32.mrf.mxu1 }
 0x274   : > { %v1511_v34 = vadd.f32 %v1461_v32, %v3483_v20 }
 0x275   : > { %v1955_v44 = vadd.f32 %v1903_v8, %v1733_v46 }
 0x276   : > { %v2128_v24 = vpop.f32.mrf.mxu0 }
 0x277   : > { %v3738_v39 = vadd.f32 %v2125_v13, %v1955_v44 }
 0x279   : > { %2209 = vst [vmem:[%s3577_s23 + $0x98] sm:$0xff] %v3738_v39 }
 0x27a   : > { %v1684_v6 = vpop.f32.mrf.mxu2 }
 0x27b   : > { %v1906_v2 = vpop.f32.mrf.mxu3  ;;  %v1734_v60 = vadd.f32 %v1684_v6, %v1511_v34  ;;  %v1463_v36 = vpop.f32.mrf.mxu1 }
 0x27c   : > { %v1512_v11 = vadd.f32 %v1463_v36, %v3493_v51 }
 0x27d   : > { %v1956_v55 = vadd.f32 %v1906_v2, %v1734_v60 }
 0x27e   : > { %v2130_v49 = vpop.f32.mrf.mxu0 }
 0x27f   : > { %v3743_v21 = vadd.f32 %v2128_v24, %v1956_v55 }
 0x281   : > { %2210 = vst [vmem:[%s3577_s23 + $0xa0] sm:$0xff] %v3743_v21 }
 0x282   : > { %v1686_v58 = vpop.f32.mrf.mxu2 }
 0x283   : > { %v1908_v62 = vpop.f32.mrf.mxu3  ;;  %v1735_v18 = vadd.f32 %v1686_v58, %v1512_v11  ;;  %v1466_v22 = vpop.f32.mrf.mxu1 }
 0x284   : > { %v1513_v14 = vadd.f32 %v1466_v22, %v3498_v59 }
 0x285   : > { %v1957_v12 = vadd.f32 %v1908_v62, %v1735_v18 }
 0x286   : > { %v2133_v20 = vpop.f32.mrf.mxu0 }
 0x287   : > { %v3748_v27 = vadd.f32 %v2130_v49, %v1957_v12 }
 0x289   : > { %2211 = vst [vmem:[%s3577_s23 + $0xa8] sm:$0xff] %v3748_v27 }
 0x28a   : > { %v1689_v48 = vpop.f32.mrf.mxu2 }
 0x28b   : > { %v1911_v16 = vpop.f32.mrf.mxu3  ;;  %v1736_v61 = vadd.f32 %v1689_v48, %v1513_v14  ;;  %v1468_v30 = vpop.f32.mrf.mxu1 }
 0x28c   : > { %v1514_v63 = vadd.f32 %v1468_v30, %v3508_v33 }
 0x28d   : > { %v1958_v10 = vadd.f32 %v1911_v16, %v1736_v61 }
 0x28e   : > { %v2135_v51 = vpop.f32.mrf.mxu0 }
 0x28f   : > { %v3753_v15 = vadd.f32 %v2133_v20, %v1958_v10 }
 0x291   : > { %2212 = vst [vmem:[%s3577_s23 + $0xb0] sm:$0xff] %v3753_v15 }
 0x292   : > { %v1691_v45 = vpop.f32.mrf.mxu2 }
 0x293   : > { %v1913_v13 = vpop.f32.mrf.mxu3  ;;  %v1737_v35 = vadd.f32 %v1691_v45, %v1514_v63  ;;  %v1471_v23 = vpop.f32.mrf.mxu1 }
 0x294   : > { %v1515_v32 = vadd.f32 %v1471_v23, %v3513_v42 }
 0x295   : > { %v1959_v8 = vadd.f32 %v1913_v13, %v1737_v35 }
 0x296   : > { %v2138_v59 = vpop.f32.mrf.mxu0 }
 0x297   : > { %v3758_v46 = vadd.f32 %v2135_v51, %v1959_v8 }
 0x299   : > { %2213 = vst [vmem:[%s3577_s23 + $0xb8] sm:$0xff] %v3758_v46 }
 0x29a   : > { %v1694_v44 = vpop.f32.mrf.mxu2 }
 0x29b   : > { %v1916_v24 = vpop.f32.mrf.mxu3  ;;  %v1738_v34 = vadd.f32 %v1694_v44, %v1515_v32  ;;  %v1473_v6 = vpop.f32.mrf.mxu1 }
 0x29c   : > { %v1516_v36 = vadd.f32 %v1473_v6, %v3523_v40 }
 0x29d   : > { %v1960_v2 = vadd.f32 %v1916_v24, %v1738_v34 }
 0x29e   : > { %v2140_v33 = vpop.f32.mrf.mxu0 }
 0x29f   : > { %v3763_v60 = vadd.f32 %v2138_v59, %v1960_v2 }
 0x2a1   : > { %2214 = vst [vmem:[%s3577_s23 + $0xc0] sm:$0xff] %v3763_v60 }
 0x2a2   : > { %v1696_v55 = vpop.f32.mrf.mxu2 }
 0x2a3   : > { %v1918_v49 = vpop.f32.mrf.mxu3  ;;  %v1739_v11 = vadd.f32 %v1696_v55, %v1516_v36  ;;  %v1476_v58 = vpop.f32.mrf.mxu1 }
 0x2a4   : > { %v1517_v22 = vadd.f32 %v1476_v58, %v3528_v5 }
 0x2a5   : > { %v1961_v62 = vadd.f32 %v1918_v49, %v1739_v11 }
 0x2a6   : > { %v2143_v42 = vpop.f32.mrf.mxu0 }
 0x2a7   : > { %v3768_v18 = vadd.f32 %v2140_v33, %v1961_v62 }
 0x2a9   : > { %2215 = vst [vmem:[%s3577_s23 + $0xc8] sm:$0xff] %v3768_v18 }
 0x2aa   : > { %v1699_v12 = vpop.f32.mrf.mxu2 }
 0x2ab   : > { %v1921_v20 = vpop.f32.mrf.mxu3  ;;  %v1740_v14 = vadd.f32 %v1699_v12, %v1517_v22  ;;  %v1478_v48 = vpop.f32.mrf.mxu1 }
 0x2ac   : > { %v1518_v30 = vadd.f32 %v1478_v48, %v3538_v1 }
 0x2ad   : > { %v1962_v16 = vadd.f32 %v1921_v20, %v1740_v14 }
 0x2ae   : > { %v2145_v40 = vpop.f32.mrf.mxu0 }
 0x2af   : > { %v3773_v61 = vadd.f32 %v2143_v42, %v1962_v16 }
 0x2b1   : > { %2216 = vst [vmem:[%s3577_s23 + $0xd0] sm:$0xff] %v3773_v61 }
 0x2b2   : > { %v1701_v10 = vpop.f32.mrf.mxu2 }
 0x2b3   : > { %v1923_v51 = vpop.f32.mrf.mxu3  ;;  %v1741_v63 = vadd.f32 %v1701_v10, %v1518_v30  ;;  %v1481_v45 = vpop.f32.mrf.mxu1 }
 0x2b4   : > { %v1519_v23 = vadd.f32 %v1481_v45, %v3543_v4 }
 0x2b5   : > { %v1963_v13 = vadd.f32 %v1923_v51, %v1741_v63 }
 0x2b6   : > { %v2148_v35 = vpop.f32.mrf.mxu0 }
 0x2b7   : > { %v3778_v5 = vadd.f32 %v2145_v40, %v1963_v13 }
 0x2b9   : > { %2217 = vst [vmem:[%s3577_s23 + $0xd8] sm:$0xff] %v3778_v5 }
 0x2ba   : > { %v1704_v8 = vpop.f32.mrf.mxu2 }
 0x2bb   : > { %v1926_v59 = vpop.f32.mrf.mxu3  ;;  %v1742_v32 = vadd.f32 %v1704_v8, %v1519_v23  ;;  %v1483_v44 = vpop.f32.mrf.mxu1 }
 0x2bc   : > { %v1520_v34 = vadd.f32 %v1483_v44, %v3553_v50 }
 0x2bd   : > { %v1964_v24 = vadd.f32 %v1926_v59, %v1742_v32 }
 0x2be   : > { %v2150_v6 = vpop.f32.mrf.mxu0 }
 0x2bf   : > { %v3783_v1 = vadd.f32 %v2148_v35, %v1964_v24 }
 0x2c1   : > { %2218 = vst [vmem:[%s3577_s23 + $0xe0] sm:$0xff] %v3783_v1 }
 0x2c2   : > { %v1706_v2 = vpop.f32.mrf.mxu2 }
 0x2c3   : > { %v1928_v33 = vpop.f32.mrf.mxu3  ;;  %v1743_v36 = vadd.f32 %v1706_v2, %v1520_v34  ;;  %v1486_v55 = vpop.f32.mrf.mxu1 }
 0x2c4   : > { %v1521_v11 = vadd.f32 %v1486_v55, %v3558_v47 }
 0x2c5   : > { %v1965_v49 = vadd.f32 %v1928_v33, %v1743_v36 }
 0x2c6   : > { %v2153_v22 = vpop.f32.mrf.mxu0 }
 0x2c7   : > { %v3788_v4 = vadd.f32 %v2150_v6, %v1965_v49 }
 0x2c9   : > { %2219 = vst [vmem:[%s3577_s23 + $0xe8] sm:$0xff] %v3788_v4 }
 0x2ca   : > { %v1709_v58 = vpop.f32.mrf.mxu2 }
 0x2cb   : > { %v1931_v62 = vpop.f32.mrf.mxu3  ;;  %v1744_v42 = vadd.f32 %v1709_v58, %v1521_v11  ;;  %v1488_v50 = vpop.f32.mrf.mxu1 }
 0x2cc   : > { %v1522_v14 = vadd.f32 %v1488_v50, %v3568_v37 }
 0x2cd   : > { %v1966_v12 = vadd.f32 %v1931_v62, %v1744_v42 }
 0x2ce   : > { %v2155_v10 = vpop.f32.mrf.mxu0 }
 0x2cf   : > { %v3793_v20 = vadd.f32 %v2153_v22, %v1966_v12 }
 0x2d1   : > { %2220 = vst [vmem:[%s3577_s23 + $0xf0] sm:$0xff] %v3793_v20 }
 0x2d2   : > { %v1711_v48 = vpop.f32.mrf.mxu2 }
 0x2d3   : > { %v1745_v16 = vadd.f32 %v1711_v48, %v1522_v14  ;;  %v1933_v40 = vpop.f32.mrf.mxu3 }
 0x2d5   : > { %v1967_v30 = vadd.f32 %v1933_v40, %v1745_v16  ;;  %2225 = sbr.rel (%p2838_p5) target bundleno = 733 (0x2dd), region = 32 }
 0x2d7   : > { %v3798_v51 = vadd.f32 %v2155_v10, %v1967_v30 }
 0x2d9   : > { %2221 = vst [vmem:[%s3577_s23 + $0xf8] sm:$0xff] %v3798_v51 }
 0x2da   : > { %v2898_v47 = vmov 0.0  }
 0x2db   : > { %2226 = vst [vmem:[#allocation2] sm:$0x1] %v2898_v47 }
 0x2dc   : > { %2227 = vst [vmem:[#allocation3] sm:$0x1] %v2898_v47 }
 0x2dd PF: > { %v2229_v63 = vadd.f32 %v3588_v41, %v3579_v31  ;;  %v2269_v37 = vmul.f32 %v3579_v31, %v3579_v31  ;;  %v2270_v45 = vmul.f32 %v3588_v41, %v3588_v41  ;;  %v2271_v35 = vmul.f32 %v3598_v9, %v3598_v9  ;;  %p2839_p6 = scmp.ne.s32.totalorder %s2888_s15, 1 }
 0x2de   : > { %v2272_v8 = vmul.f32 %v3607_v28, %v3607_v28  ;;  %v2273_v44 = vmul.f32 %v3617_v19, %v3617_v19  ;;  %v2274_v41 = vmul.f32 %v3626_v43, %v3626_v43  ;;  %v2275_v6 = vmul.f32 %v3636_v25, %v3636_v25 }
 0x2df   : > { %v2230_v13 = vadd.f32 %v2229_v63, %v3598_v9  ;;  %v2301_v59 = vadd.f32 %v2270_v45, %v2269_v37  ;;  %v2276_v33 = vmul.f32 %v3645_v53, %v3645_v53  ;;  %v2277_v55 = vmul.f32 %v3655_v54, %v3655_v54 }
 0x2e0   : > { %v2278_v11 = vmul.f32 %v3664_v57, %v3664_v57  ;;  %v2279_v62 = vmul.f32 %v3674_v52, %v3674_v52  ;;  %v2280_v22 = vmul.f32 %v3683_v3, %v3683_v3  ;;  %v2281_v50 = vmul.f32 %v3693_v56, %v3693_v56 }
 0x2e1   : > { %v2231_v23 = vadd.f32 %v2230_v13, %v3607_v28  ;;  %v2302_v31 = vadd.f32 %v2301_v59, %v2271_v35  ;;  %v2282_v48 = vmul.f32 %v3705_v17, %v3705_v17  ;;  %v2283_v40 = vmul.f32 %v3713_v38, %v3713_v38 }
 0x2e2   : > { %v2284_v10 = vmul.f32 %v3718_v0, %v3718_v0  ;;  %v2285_v63 = vmul.f32 %v3723_v26, %v3723_v26  ;;  %v2286_v45 = vmul.f32 %v3728_v29, %v3728_v29  ;;  %v2287_v35 = vmul.f32 %v3733_v7, %v3733_v7 }
 0x2e3   : > { %v2232_v32 = vadd.f32 %v2231_v23, %v3617_v19  ;;  %v2303_v34 = vadd.f32 %v2302_v31, %v2272_v8  ;;  %v2288_v8 = vmul.f32 %v3738_v39, %v3738_v39  ;;  %v2290_v31 = vmul.f32 %v3748_v27, %v3748_v27 }
 0x2e5   : > { %v2233_v24 = vadd.f32 %v2232_v32, %v3626_v43  ;;  %v2304_v2 = vadd.f32 %v2303_v34, %v2273_v44  ;;  %v2289_v32 = vmul.f32 %v3743_v21, %v3743_v21 }
 0x2e7   : > { %v2234_v9 = vadd.f32 %v2233_v24, %v3636_v25  ;;  %v2305_v36 = vadd.f32 %v2304_v2, %v2274_v41  ;;  %v2291_v41 = vmul.f32 %v3753_v15, %v3753_v15  ;;  %v2293_v2 = vmul.f32 %v3763_v60, %v3763_v60 }
 0x2e9   : > { %v2235_v28 = vadd.f32 %v2234_v9, %v3645_v53  ;;  %v2306_v49 = vadd.f32 %v2305_v36, %v2275_v6  ;;  %v2292_v9 = vmul.f32 %v3758_v46, %v3758_v46 }
 0x2eb   : > { %v2236_v19 = vadd.f32 %v2235_v28, %v3655_v54  ;;  %v2307_v58 = vadd.f32 %v2306_v49, %v2276_v33  ;;  %v2294_v33 = vmul.f32 %v3768_v18, %v3768_v18  ;;  %v2296_v49 = vmul.f32 %v3778_v5, %v3778_v5 }
 0x2ed   : > { %v2237_v43 = vadd.f32 %v2236_v19, %v3664_v57  ;;  %v2308_v42 = vadd.f32 %v2307_v58, %v2277_v55  ;;  %v2295_v19 = vmul.f32 %v3773_v61, %v3773_v61 }
 0x2ef   : > { %v2238_v25 = vadd.f32 %v2237_v43, %v3674_v52  ;;  %v2309_v12 = vadd.f32 %v2308_v42, %v2278_v11  ;;  %v2297_v11 = vmul.f32 %v3783_v1, %v3783_v1  ;;  %v2299_v42 = vmul.f32 %v3793_v20, %v3793_v20 }
 0x2f1   : > { %v2239_v53 = vadd.f32 %v2238_v25, %v3683_v3  ;;  %v2310_v14 = vadd.f32 %v2309_v12, %v2279_v62  ;;  %v2298_v25 = vmul.f32 %v3788_v4, %v3788_v4 }
 0x2f3   : > { %v2240_v54 = vadd.f32 %v2239_v53, %v3693_v56  ;;  %v2311_v16 = vadd.f32 %v2310_v14, %v2280_v22  ;;  %v2300_v22 = vmul.f32 %v3798_v51, %v3798_v51 }
 0x2f5   : > { %v2241_v57 = vadd.f32 %v2240_v54, %v3705_v17  ;;  %v2312_v30 = vadd.f32 %v2311_v16, %v2281_v50 }
 0x2f7   : > { %v2242_v52 = vadd.f32 %v2241_v57, %v3713_v38  ;;  %v2313_v47 = vadd.f32 %v2312_v30, %v2282_v48 }
 0x2f9   : > { %v2243_v3 = vadd.f32 %v2242_v52, %v3718_v0  ;;  %v2314_v37 = vadd.f32 %v2313_v47, %v2283_v40  ;;  %v2228_v40 = vld [vmem:[#allocation2] sm:$0x1] }
 0x2fb   : > { %v2244_v56 = vadd.f32 %v2243_v3, %v3723_v26  ;;  %v2315_v13 = vadd.f32 %v2314_v37, %v2284_v10 }
 0x2fd   : > { %v2245_v17 = vadd.f32 %v2244_v56, %v3728_v29  ;;  %v2316_v23 = vadd.f32 %v2315_v13, %v2285_v63  ;;  %v2268_v56 = vld [vmem:[#allocation3] sm:$0x1] }
 0x2ff   : > { %v2246_v38 = vadd.f32 %v2245_v17, %v3733_v7  ;;  %v2317_v59 = vadd.f32 %v2316_v23, %v2286_v45 }
 0x301   : > { %v2247_v0 = vadd.f32 %v2246_v38, %v3738_v39  ;;  %v2318_v44 = vadd.f32 %v2317_v59, %v2287_v35 }
 0x303   : > { %v2248_v26 = vadd.f32 %v2247_v0, %v3743_v21  ;;  %v2319_v24 = vadd.f32 %v2318_v44, %v2288_v8 }
 0x305   : > { %v2249_v29 = vadd.f32 %v2248_v26, %v3748_v27  ;;  %v2320_v34 = vadd.f32 %v2319_v24, %v2289_v32 }
 0x307   : > { %v2250_v7 = vadd.f32 %v2249_v29, %v3753_v15  ;;  %v2321_v6 = vadd.f32 %v2320_v34, %v2290_v31 }
 0x309   : > { %v2251_v39 = vadd.f32 %v2250_v7, %v3758_v46  ;;  %v2322_v28 = vadd.f32 %v2321_v6, %v2291_v41 }
 0x30b   : > { %v2252_v21 = vadd.f32 %v2251_v39, %v3763_v60  ;;  %v2323_v36 = vadd.f32 %v2322_v28, %v2292_v9 }
 0x30d   : > { %v2253_v27 = vadd.f32 %v2252_v21, %v3768_v18  ;;  %v2324_v55 = vadd.f32 %v2323_v36, %v2293_v2 }
 0x30f   : > { %v2254_v15 = vadd.f32 %v2253_v27, %v3773_v61  ;;  %v2325_v43 = vadd.f32 %v2324_v55, %v2294_v33 }
 0x311   : > { %v2255_v46 = vadd.f32 %v2254_v15, %v3778_v5  ;;  %v2326_v58 = vadd.f32 %v2325_v43, %v2295_v19 }
 0x313   : > { %v2256_v60 = vadd.f32 %v2255_v46, %v3783_v1  ;;  %v2327_v62 = vadd.f32 %v2326_v58, %v2296_v49 }
 0x315   : > { %v2257_v18 = vadd.f32 %v2256_v60, %v3788_v4  ;;  %v2328_v53 = vadd.f32 %v2327_v62, %v2297_v11 }
 0x317   : > { %v2258_v61 = vadd.f32 %v2257_v18, %v3793_v20  ;;  %v2329_v12 = vadd.f32 %v2328_v53, %v2298_v25 }
 0x319   : > { %v2259_v5 = vadd.f32 %v2258_v61, %v3798_v51  ;;  %v2330_v54 = vadd.f32 %v2329_v12, %v2299_v42 }
 0x31b   : > { %v2260_v1 = vrot.slane %v2259_v5, 4  ;;  %v2331_v14 = vadd.f32 %v2330_v54, %v2300_v22 }
 0x31d   : > { %v2261_v50 = vadd.f32 %v2260_v1, %v2259_v5  ;;  %v2332_v48 = vrot.slane %v2331_v14, 4 }
 0x31f   : > { %v2262_v57 = vrot.slane %v2261_v50, 2  ;;  %v2333_v16 = vadd.f32 %v2332_v48, %v2331_v14 }
 0x321   : > { %v2263_v4 = vadd.f32 %v2262_v57, %v2261_v50  ;;  %v2334_v30 = vrot.slane %v2333_v16, 2 }
 0x323   : > { %v2264_v52 = vrot.slane %v2263_v4, 1  ;;  %v2335_v20 = vadd.f32 %v2334_v30, %v2333_v16 }
 0x325   : > { %v2265_v3 = vadd.f32 %v2264_v52, %v2263_v4  ;;  %v2336_v47 = vrot.slane %v2335_v20, 1 }
 0x327   : > { %v2266_v10 = vadd.f32 %v2265_v3, %v2228_v40  ;;  %v2337_v63 = vadd.f32 %v2336_v47, %v2335_v20  ;;  %2343 = sbr.rel (%p2839_p6) target bundleno = 820 (0x334), region = 36 }
 0x329   : > { %2267 = vst [vmem:[#allocation2] sm:$0x1] %v2266_v10  ;;  %v2338_v51 = vadd.f32 %v2337_v63, %v2268_v56 }
 0x32b   : > { %2339 = vst [vmem:[#allocation3] sm:$0x1] %v2338_v51 }
 0x330   : > { %v2344_v37 = vld [vmem:[#allocation2] sm:$0x1] }
 0x331   : > { %2345 = vst [vmem:[%s3918_s3] sm:$0x1] %v2344_v37 }
 0x332   : > { %v2346_v17 = vld [vmem:[#allocation3] sm:$0x1] }
 0x333   : > { %2347 = vst [vmem:[%s3919_s4] sm:$0x1] %v2346_v17 }
 0x334 PF: > { %s15_s17 = sadd.s32 1, %s2896_s17   ;;  %s3962_s15 = smov %s2892_s16 }
 0x335   : > { %p12_p7 = scmp.ge.s32.totalorder %s15_s17, 4   ;;  %s3963_s16 = smov %s3965_s18 }
 0x337   :  { %14 = sbr.rel (!%p12_p7) target bundleno = 2 (0x2), region = 103 }

</bundles_post_ra>
